<compile_context>
chip_gen: v7x
topology: tpu7x:2x2x1
jax: 0.10.0
libtpu: 0.0.40
codegen_flags: <defaults>
</compile_context>

<pallas_src>
import jax
import jax.numpy as jnp
from jax.experimental import pallas as pl
from jax.experimental.pallas import tpu as pltpu


# ----------------------------------------------------------------- kernel
def _se_block_kernel(x_ref, w1_ref, b1_ref, w2_ref, b2_ref, o_ref):
    """Fused squeeze-excitation for one batch element, native NCHW layout.

    x_ref : (1, C, HW)   activation block (C on sublanes, HW lane-dense)
    w1_ref: (MID, C)     b1_ref: (MID, 1)   (PyTorch (out, in) weight layout)
    w2_ref: (C, MID)     b2_ref: (C, 1)
    o_ref : (1, C, HW)
    """
    hw = x_ref.shape[2]

    # ---- Squeeze: spatial mean via the MXU (x @ ones column), f32 accumulate.
    x = x_ref[0].astype(jnp.float32)                        # (C, HW)
    ones_col = jnp.ones((hw, 1), dtype=jnp.float32)         # (HW, 1)
    y = jnp.dot(x, ones_col, preferred_element_type=jnp.float32) * (1.0 / hw)

    # ---- Excite: two tiny FCs in column orientation (MXU, f32 accumulate),
    #      exact SiLU / sigmoid (operands are 1-2 vregs; approx buys nothing).
    h = jnp.dot(w1_ref[...], y, preferred_element_type=jnp.float32) + b1_ref[...]
    h = h * (1.0 / (1.0 + jnp.exp(-h)))                     # SiLU (exact)
    z = jnp.dot(w2_ref[...], h, preferred_element_type=jnp.float32) + b2_ref[...]
    s = 1.0 / (1.0 + jnp.exp(-z))                           # sigmoid, (C, 1)

    # ---- Scale: re-read x from the VMEM block (keeps its live range short)
    #      and broadcast the per-channel gate over the lane / spatial axis.
    o_ref[0] = (x_ref[0].astype(jnp.float32) * s).astype(o_ref.dtype)


# ----------------------------------------------------------------- wrapper
@jax.jit
def se_block(x_nchw, w1, b1, w2, b2):
    """SEBlock forward.  x_nchw: (N, C, H, W) -> (N, C, H, W).

    Weights in PyTorch layout: w1 (C//r, C), b1 (C//r,), w2 (C, C//r), b2 (C,).
    """
    n, c, h, w = x_nchw.shape
    hw = h * w
    mid = w1.shape[0]

    # Pure view reshapes (row-major) -- no transpose, no extra HBM traffic.
    x = x_nchw.reshape(n, c, hw)
    b1c = b1.reshape(mid, 1).astype(jnp.float32)
    b2c = b2.reshape(c, 1).astype(jnp.float32)

    # VMEM request sized from actual blocks: in + out double-buffered, params
    # (also double-buffered, though never re-fetched), plus compiler headroom.
    block_bytes = c * hw * x_nchw.dtype.itemsize
    param_bytes = 4 * (w1.size + w2.size + mid + c)
    vmem_limit = 4 * block_bytes + 2 * param_bytes + (4 << 20)

    out = pl.pallas_call(
        _se_block_kernel,
        out_shape=jax.ShapeDtypeStruct((n, c, hw), x_nchw.dtype),
        grid=(n,),
        in_specs=[
            pl.BlockSpec((1, c, hw), lambda i: (i, 0, 0)),   # x: one sample / step
            pl.BlockSpec((mid, c), lambda i: (0, 0)),        # w1 (resident across grid)
            pl.BlockSpec((mid, 1), lambda i: (0, 0)),        # b1
            pl.BlockSpec((c, mid), lambda i: (0, 0)),        # w2
            pl.BlockSpec((c, 1), lambda i: (0, 0)),          # b2
        ],
        out_specs=pl.BlockSpec((1, c, hw), lambda i: (i, 0, 0)),
        compiler_params=pltpu.CompilerParams(
            dimension_semantics=("parallel",),
            vmem_limit_bytes=vmem_limit,
        ),
    )(x, w1.astype(jnp.float32), b1c, w2.astype(jnp.float32), b2c)

    return out.reshape(n, c, h, w)


# ----------------------------------------------------------------- reference
def se_block_ref(x, w1, b1, w2, b2):
    """Pure-JAX mirror of the PyTorch SEBlock.forward (for validation)."""
    y = x.mean(axis=(-1, -2))                     # (N, C)
    y = jax.nn.silu(y @ w1.T + b1)                # f1 (PyTorch (out, in) weights)
    y = jax.nn.sigmoid(y @ w2.T + b2)             # f2
    return x * y[:, :, None, None]


# ----------------------------------------------------------------- main
if __name__ == "__main__":
    # Accurate f32 matmuls on both the XLA reference and (via the traced dot
    # precision) inside the kernel so parity can be checked tightly.
    jax.config.update("jax_default_matmul_precision", "highest")

    # SEBlock(dim=128, reduction_ratio=4) on a (2, 128, 16, 16) NCHW activation.
    N, C, H, W = 2, 128, 16, 16
    R = 4
    MID = C // R

    key = jax.random.PRNGKey(0)
    kx, kw1, kb1, kw2, kb2 = jax.random.split(key, 5)

    x = jax.random.normal(kx, (N, C, H, W), jnp.float32)

    # nn.Linear-style init: uniform(-1/sqrt(fan_in), 1/sqrt(fan_in)),
    # weights kept in PyTorch (out_features, in_features) layout.
    lim1 = 1.0 / (C ** 0.5)
    lim2 = 1.0 / (MID ** 0.5)
    w1 = jax.random.uniform(kw1, (MID, C), jnp.float32, -lim1, lim1)
    b1 = jax.random.uniform(kb1, (MID,), jnp.float32, -lim1, lim1)
    w2 = jax.random.uniform(kw2, (C, MID), jnp.float32, -lim2, lim2)
    b2 = jax.random.uniform(kb2, (C,), jnp.float32, -lim2, lim2)

    out = se_block(x, w1, b1, w2, b2)
    jax.block_until_ready(out)

    ref = se_block_ref(x, w1, b1, w2, b2)
    assert out.shape == (N, C, H, W)
    assert bool(jnp.all(jnp.isfinite(out)))
    # Exact SiLU/sigmoid in the kernel -> much tighter tolerance than before.
    assert bool(jnp.allclose(out, ref, atol=2e-3, rtol=2e-3))
    print("KERNEL_OK")
</pallas_src>

<mosaic_0001>
module attributes {stable_mosaic.version = 11 : i64} {
  func.func @_se_block_kernel(%arg0: i32, %arg1: memref<1x128x256xf32, #tpu.memory_space<vmem>>, %arg2: memref<32x128xf32, #tpu.memory_space<vmem>>, %arg3: memref<32x1xf32, #tpu.memory_space<vmem>>, %arg4: memref<128x32xf32, #tpu.memory_space<vmem>>, %arg5: memref<128x1xf32, #tpu.memory_space<vmem>>, %arg6: memref<1x128x256xf32, #tpu.memory_space<vmem>>) attributes {dimension_semantics = [#tpu.dimension_semantics<parallel>], iteration_bounds = array<i64: 2>, scalar_prefetch = 0 : i64, scratch_operands = 0 : i64, tpu.core_type = #tpu.core_type<tc>, window_params = [{transform_indices = @transform_0, window_bounds = array<i64: 1, 128, 256>}, {pipeline_mode = #tpu.pipeline_mode<synchronous>, transform_indices = @transform_1, window_bounds = array<i64: 32, 128>}, {pipeline_mode = #tpu.pipeline_mode<synchronous>, transform_indices = @transform_2, window_bounds = array<i64: 32, 1>}, {pipeline_mode = #tpu.pipeline_mode<synchronous>, transform_indices = @transform_3, window_bounds = array<i64: 128, 32>}, {pipeline_mode = #tpu.pipeline_mode<synchronous>, transform_indices = @transform_4, window_bounds = array<i64: 128, 1>}, {transform_indices = @transform_5, window_bounds = array<i64: 1, 128, 256>}]} {
    %c0 = arith.constant 0 : index
    %c0_0 = arith.constant 0 : index
    %c0_1 = arith.constant 0 : index
    %0 = vector.load %arg1[%c0, %c0_0, %c0_1] : memref<1x128x256xf32, #tpu.memory_space<vmem>>, vector<1x128x256xf32>
    %1 = vector.shape_cast %0 : vector<1x128x256xf32> to vector<128x256xf32>
    %cst = arith.constant 1.000000e+00 : f32
    %2 = vector.broadcast %cst : f32 to vector<256x1xf32>
    %cst_2 = arith.constant dense<0.000000e+00> : vector<128x1xf32>
    %3 = tpu.matmul %1, %2, %cst_2 {dimension_numbers = #tpu.dot_dimension_numbers<[1], [0], [0], [1], [0, 0, 1, 1], [], []>, precision = #tpu.contract_precision<fp32>} : vector<128x256xf32>, vector<256x1xf32>, vector<128x1xf32> -> vector<128x1xf32>
    %cst_3 = arith.constant 3.906250e-03 : f32
    %4 = vector.broadcast %cst_3 : f32 to vector<128x1xf32>
    %5 = arith.mulf %3, %4 : vector<128x1xf32>
    %c0_4 = arith.constant 0 : index
    %c0_5 = arith.constant 0 : index
    %6 = vector.load %arg2[%c0_4, %c0_5] : memref<32x128xf32, #tpu.memory_space<vmem>>, vector<32x128xf32>
    %cst_6 = arith.constant dense<0.000000e+00> : vector<32x1xf32>
    %7 = tpu.matmul %6, %5, %cst_6 {dimension_numbers = #tpu.dot_dimension_numbers<[1], [0], [0], [1], [0, 0, 1, 1], [], []>, precision = #tpu.contract_precision<fp32>} : vector<32x128xf32>, vector<128x1xf32>, vector<32x1xf32> -> vector<32x1xf32>
    %c0_7 = arith.constant 0 : index
    %c0_8 = arith.constant 0 : index
    %8 = vector.load %arg3[%c0_7, %c0_8] : memref<32x1xf32, #tpu.memory_space<vmem>>, vector<32x1xf32>
    %9 = arith.addf %7, %8 : vector<32x1xf32>
    %cst_9 = arith.constant 0.000000e+00 : f32
    %10 = vector.broadcast %cst_9 : f32 to vector<32x1xf32>
    %11 = arith.subf %10, %9 : vector<32x1xf32>
    %12 = math.exp %11 : vector<32x1xf32>
    %cst_10 = arith.constant 1.000000e+00 : f32
    %13 = vector.broadcast %cst_10 : f32 to vector<32x1xf32>
    %14 = arith.addf %13, %12 : vector<32x1xf32>
    %cst_11 = arith.constant 1.000000e+00 : f32
    %15 = vector.broadcast %cst_11 : f32 to vector<32x1xf32>
    %16 = arith.divf %15, %14 : vector<32x1xf32>
    %17 = arith.mulf %9, %16 : vector<32x1xf32>
    %c0_12 = arith.constant 0 : index
    %c0_13 = arith.constant 0 : index
    %18 = vector.load %arg4[%c0_12, %c0_13] : memref<128x32xf32, #tpu.memory_space<vmem>>, vector<128x32xf32>
    %cst_14 = arith.constant dense<0.000000e+00> : vector<128x1xf32>
    %19 = tpu.matmul %18, %17, %cst_14 {dimension_numbers = #tpu.dot_dimension_numbers<[1], [0], [0], [1], [0, 0, 1, 1], [], []>, precision = #tpu.contract_precision<fp32>} : vector<128x32xf32>, vector<32x1xf32>, vector<128x1xf32> -> vector<128x1xf32>
    %c0_15 = arith.constant 0 : index
    %c0_16 = arith.constant 0 : index
    %20 = vector.load %arg5[%c0_15, %c0_16] : memref<128x1xf32, #tpu.memory_space<vmem>>, vector<128x1xf32>
    %21 = arith.addf %19, %20 : vector<128x1xf32>
    %cst_17 = arith.constant 0.000000e+00 : f32
    %22 = vector.broadcast %cst_17 : f32 to vector<128x1xf32>
    %23 = arith.subf %22, %21 : vector<128x1xf32>
    %24 = math.exp %23 : vector<128x1xf32>
    %cst_18 = arith.constant 1.000000e+00 : f32
    %25 = vector.broadcast %cst_18 : f32 to vector<128x1xf32>
    %26 = arith.addf %25, %24 : vector<128x1xf32>
    %cst_19 = arith.constant 1.000000e+00 : f32
    %27 = vector.broadcast %cst_19 : f32 to vector<128x1xf32>
    %28 = arith.divf %27, %26 : vector<128x1xf32>
    %c0_20 = arith.constant 0 : index
    %c0_21 = arith.constant 0 : index
    %c0_22 = arith.constant 0 : index
    %29 = vector.load %arg1[%c0_20, %c0_21, %c0_22] : memref<1x128x256xf32, #tpu.memory_space<vmem>>, vector<1x128x256xf32>
    %30 = vector.shape_cast %29 : vector<1x128x256xf32> to vector<128x256xf32>
    %31 = vector.broadcast %28 : vector<128x1xf32> to vector<128x256xf32>
    %32 = arith.mulf %30, %31 : vector<128x256xf32>
    %c0_23 = arith.constant 0 : index
    %c0_24 = arith.constant 0 : index
    %c0_25 = arith.constant 0 : index
    %33 = vector.load %arg6[%c0_23, %c0_24, %c0_25] : memref<1x128x256xf32, #tpu.memory_space<vmem>>, vector<1x128x256xf32>
    %34 = vector.shape_cast %33 : vector<1x128x256xf32> to vector<128x256xf32>
    %35 = vector.shape_cast %32 : vector<128x256xf32> to vector<1x128x256xf32>
    tpu.vector_store %arg6[%c0_23, %c0_24, %c0_25], %35 {strides = array<i32>} : memref<1x128x256xf32, #tpu.memory_space<vmem>>, vector<1x128x256xf32>,
    return
  }
  func.func @transform_0(%arg0: i32) -> (i32, i32, i32) {
    %c0_i32 = arith.constant 0 : i32
    %c0_i32_0 = arith.constant 0 : i32
    %c0_i32_1 = arith.constant 0 : i32
    return %arg0, %c0_i32, %c0_i32_0 : i32, i32, i32
  }
  func.func @transform_1(%arg0: i32) -> (i32, i32) {
    %c0_i32 = arith.constant 0 : i32
    %c0_i32_0 = arith.constant 0 : i32
    %c0_i32_1 = arith.constant 0 : i32
    return %c0_i32, %c0_i32_0 : i32, i32
  }
  func.func @transform_2(%arg0: i32) -> (i32, i32) {
    %c0_i32 = arith.constant 0 : i32
    %c0_i32_0 = arith.constant 0 : i32
    %c0_i32_1 = arith.constant 0 : i32
    return %c0_i32, %c0_i32_0 : i32, i32
  }
  func.func @transform_3(%arg0: i32) -> (i32, i32) {
    %c0_i32 = arith.constant 0 : i32
    %c0_i32_0 = arith.constant 0 : i32
    %c0_i32_1 = arith.constant 0 : i32
    return %c0_i32, %c0_i32_0 : i32, i32
  }
  func.func @transform_4(%arg0: i32) -> (i32, i32) {
    %c0_i32 = arith.constant 0 : i32
    %c0_i32_0 = arith.constant 0 : i32
    %c0_i32_1 = arith.constant 0 : i32
    return %c0_i32, %c0_i32_0 : i32, i32
  }
  func.func @transform_5(%arg0: i32) -> (i32, i32, i32) {
    %c0_i32 = arith.constant 0 : i32
    %c0_i32_0 = arith.constant 0 : i32
    %c0_i32_1 = arith.constant 0 : i32
    return %arg0, %c0_i32, %c0_i32_0 : i32, i32, i32
  }
}

</mosaic_0001>

<bundles_post_ra>
// kernel: se_block.1
= control target key start
LH: loop header
LB: loop body
LE: loop exit
PB: predicated region body
PF: predicated region fallthrough
CT: control target
= control target key end

     0   :  { %s5362_s18 = smov 0   ;;  %s6854_s0 = inlined_call_operand.vmem [shape: f32[2,128,256], index: 0, kind: input, shape index: {}]   ;;  %s6855_s1 = inlined_call_operand.vmem [shape: f32[32,128], index: 1, kind: input, shape index: {}]   ;;  %s6856_s2 = inlined_call_operand.vmem [shape: f32[32,1], index: 2, kind: input, shape index: {}]   ;;  %s6857_s3 = inlined_call_operand.vmem [shape: f32[128,32], index: 3, kind: input, shape index: {}]   ;;  %s6858_s4 = inlined_call_operand.vmem [shape: f32[128,1], index: 4, kind: input, shape index: {}]   ;;  %s6859_s5 = inlined_call_operand.vmem [shape: f32[2,128,256], index: 5, kind: output, shape index: {}]  }
   0x1 LB: > { %s3871_s19 = sadd.s32 4294967295, %s5327_s18   ;;  %p3875_p0 = scmp.ge.s32.totalorder %s5327_s18, 1  ;;  %s5327_s18 = sphi %s5362_s18, %s15_s18  }
   0x2   : > { %p187_p1 = scmp.lt.s32.totalorder %s5327_s18, 3 }
   0x4   : > { %p188_p2 = pnand %p3875_p0, %p187_p1 }
   0x6   : > { %191 = sbr.rel (%p188_p2) target bundleno = 1420 (0x58c), region = 40 }
   0xd   : > { %p215_p3 = scmp.lt.s32.totalorder %s3871_s19, 1  ;;  %v6876_v0 = vmov 1.0|1.0   ;;  %v6875_v1 = vmov 0.0   ;;  %vm2397_vm0 = vcmask 261120  }
   0xe   : > { %4784 = vmatprep.subr.bf16.mxu0 %v6876_v0  ;;  %562 = vmatprep.subr.mxu1 %v6875_v1 }
   0xf   : > { %4785 = vmatpush3.bf16.msra.mxu0 %v6876_v0  ;;  %563 = vmatpush1.msra.mxu1 %v6875_v1  ;;  %s6978_s19 = smov (!%p215_p3, %s3871_s19), 1 }
  0x10   : > { %4786 = vmatprep.subr.bf16.mxu0 %v6876_v0  ;;  %739 = vmatprep.subr.mxu1 %v6875_v1  ;;  %s3882_s20 = sshll.u32 %s6978_s19, 8 }
  0x11   : > { %s5384_s23 = scalar_lea.vmem %s6854_s0, %s3882_s20  ;;  %s6785_s21 = scalar_lea.vmem %s6859_s5, %s3882_s20 }
  0x12   : > { %v226_v2 = vld [vmem:[%s5384_s23 + $0x8] sm:$0xff]  ;;  %v225_v3 = vld [vmem:[%s5384_s23] sm:$0xff]  ;;  %v228_v4 = vld [vmem:[%s5384_s23 + $0x18] sm:$0xff] }
  0x13   : > { %4787 = vmatpush3.bf16.msra.mxu0 %v6876_v0  ;;  %v5391_v5 = vand.u32 4294901760, %v226_v2  ;;  %v5393_v6 = vand.u32 4294901760, %v225_v3  ;;  %v5395_v7 = vand.u32 4294901760, %v228_v4  ;;  %v227_v8 = vld [vmem:[%s5384_s23 + $0x10] sm:$0xff]  ;;  %v230_v9 = vld [vmem:[%s5384_s23 + $0x28] sm:$0xff]  ;;  %v229_v13 = vld [vmem:[%s5384_s23 + $0x20] sm:$0xff] }
  0x14   : > { %4788 = vmatprep.subr.bf16.mxu0 %v6876_v0  ;;  %v5405_v11 = vand.u32 4294901760, %v227_v8  ;;  %v5409_v12 = vand.u32 4294901760, %v230_v9  ;;  %v232_v15 = vld [vmem:[%s5384_s23 + $0x38] sm:$0xff]  ;;  %v5421_v17 = vand.u32 4294901760, %v229_v13  ;;  %v231_v19 = vld [vmem:[%s5384_s23 + $0x30] sm:$0xff]  ;;  %v234_v21 = vld [vmem:[%s5384_s23 + $0x48] sm:$0xff] }
  0x15   : > { %627 = vmatprep.mubr.f32.mxu1 %v5391_v5  ;;  %v5401_v10 = vsub.f32 %v226_v2, %v5391_v5  ;;  %v5425_v18 = vand.u32 4294901760, %v232_v15  ;;  %v5430_v22 = vsub.f32 %v225_v3, %v5393_v6  ;;  %v5434_v23 = vand.u32 4294901760, %v231_v19  ;;  %v233_v26 = vld [vmem:[%s5384_s23 + $0x40] sm:$0xff]  ;;  %v236_v27 = vld [vmem:[%s5384_s23 + $0x58] sm:$0xff]  ;;  %v235_v34 = vld [vmem:[%s5384_s23 + $0x50] sm:$0xff] }
  0x16   : > { %629 = vmatmul.mubr.f32.vlgmr.msra.gmra.mrb[0].mxu1 %v5393_v6  ;;  %v5437_v24 = vsub.f32 %v228_v4, %v5395_v7  ;;  %v5441_v25 = vand.u32 4294901760, %v234_v21  ;;  %v5447_v29 = vsub.f32 %v227_v8, %v5405_v11  ;;  %v5451_v30 = vand.u32 4294901760, %v233_v26  ;;  %v238_v35 = vld [vmem:[%s5384_s23 + $0x68] sm:$0xff]  ;;  %v5467_v37 = vld [vmem:[%s5384_s23 + $0x60] sm:$0xff]  ;;  %v5492_v46 = vld [vmem:[%s5384_s23 + $0x78] sm:$0xff] }
  0x17   : > { %4789 = vmatpush3.bf16.msra.mxu0 %v6876_v0  ;;  %634 = vmatprep.mubr.f32.mxu1 %v5395_v7  ;;  %v6874_v14 = vand.u32 4294901760, %v5401_v10  ;;  %v6871_v28 = vand.u32 4294901760, %v5430_v22  ;;  %v5455_v32 = vsub.f32 %v230_v9, %v5409_v12  ;;  %v5459_v33 = vand.u32 4294901760, %v236_v27  ;;  %v5498_v49 = vld [vmem:[%s5384_s23 + $0x70] sm:$0xff]  ;;  %v5522_v58 = vld [vmem:[%s5384_s23 + $0x88] sm:$0xff]  ;;  %v5528_v61 = vld [vmem:[%s5384_s23 + $0x80] sm:$0xff] }
  0x18   : > { %4790 = vmatprep.subr.bf16.mxu0 %v6876_v0  ;;  %740 = vmatpush1.msra.mxu1 %v6875_v1  ;;  %v6870_v31 = vand.u32 4294901760, %v5437_v24  ;;  %v6869_v38 = vand.u32 4294901760, %v5447_v29  ;;  %v5471_v39 = vsub.f32 %v229_v13, %v5421_v17  ;;  %v5475_v40 = vand.u32 4294901760, %v235_v34 }
  0x19   : > { %v324_v16 = vsub.f32 %v5401_v10, %v6874_v14  ;;  %1189 = vmatprep.subr.mxu1 %v6875_v1  ;;  %v330_v36 = vsub.f32 %v5430_v22, %v6871_v28  ;;  %v6868_v42 = vand.u32 4294901760, %v5455_v32  ;;  %v5482_v43 = vsub.f32 %v232_v15, %v5425_v18  ;;  %v5551_v15 = vld [vmem:[%s5384_s23 + $0x98] sm:$0xff]  ;;  %v5684_v14 = vld [vmem:[%s5384_s23 + $0xd0] sm:$0xff] }
  0x1a   : > { %636 = vmatmul.mubr.f32.gmra.mrb[2].mxu1 %v5405_v11  ;;  %v339_v41 = vsub.f32 %v5437_v24, %v6870_v31  ;;  %v5486_v44 = vand.u32 4294901760, %v238_v35  ;;  %v5489_v45 = vand.u32 4294901760, %v5467_v37  ;;  %v345_v48 = vsub.f32 %v5447_v29, %v6869_v38 }
  0x1b   : > { %4791 = vmatpush3.bf16.msra.mxu0 %v6876_v0  ;;  %641 = vmatprep.mubr.f32.mxu1 %v5409_v12  ;;  %v325_v20 = vand.u32 4294901760, %v324_v16  ;;  %v331_v47 = vand.u32 4294901760, %v330_v36  ;;  %v6865_v50 = vand.u32 4294901760, %v5471_v39  ;;  %v5502_v51 = vsub.f32 %v231_v19, %v5434_v23 }
  0x1c   : > { %4792 = vmatprep.subr.bf16.mxu0 %v6876_v0  ;;  %6912 = vst [vmem:[#allocation2_spill] sm:$0xff] %v5486_v44  ;;  %6913 = vst [vmem:[#allocation3_spill] sm:$0xff] %v5489_v45  ;;  %v340_v52 = vand.u32 4294901760, %v339_v41  ;;  %v354_v53 = vsub.f32 %v5455_v32, %v6868_v42  ;;  %v6864_v54 = vand.u32 4294901760, %v5482_v43  ;;  %v5511_v55 = vsub.f32 %v234_v21, %v5441_v25  ;;  %v5652_v42 = vld [vmem:[%s5384_s23 + $0xc0] sm:$0xff] }
  0x1d   : > { %326 = vmatprep.mubr.f32.mxu0 %v325_v20  ;;  %v5515_v56 = vand.u32 4294901760, %v5492_v46  ;;  %v5519_v57 = vand.u32 4294901760, %v5498_v49  ;;  %v346_v59 = vand.u32 4294901760, %v345_v48  ;;  %v360_v60 = vsub.f32 %v5471_v39, %v6865_v50  ;;  %v5558_v20 = vld [vmem:[%s5384_s23 + $0x90] sm:$0xff] }
  0x1e   : > { %643 = vmatmul.mubr.f32.gmra.mrb[4].mxu1 %v5421_v17  ;;  %v6863_v62 = vand.u32 4294901760, %v5502_v51  ;;  %v5532_v63 = vsub.f32 %v233_v26, %v5451_v30  ;;  %v355_v2 = vand.u32 4294901760, %v354_v53  ;;  %v369_v3 = vsub.f32 %v5482_v43, %v6864_v54 }
  0x1f   : > { %4793 = vmatpush3.bf16.msra.mxu0 %v6876_v0  ;;  %648 = vmatprep.mubr.f32.mxu1 %v5425_v18  ;;  %6914 = vst [vmem:[#allocation4_spill] sm:$0xff] %v5515_v56  ;;  %6915 = vst [vmem:[#allocation5_spill] sm:$0xff] %v5519_v57  ;;  %v6862_v4 = vand.u32 4294901760, %v5511_v55  ;;  %v5540_v8 = vsub.f32 %v236_v27, %v5459_v33  ;;  %v5544_v9 = vand.u32 4294901760, %v5522_v58  ;;  %v5548_v13 = vand.u32 4294901760, %v5528_v61 }
  0x20   : > { %4794 = vmatprep.subr.bf16.mxu0 %v6876_v0  ;;  %v361_v16 = vand.u32 4294901760, %v360_v60  ;;  %v375_v19 = vsub.f32 %v5502_v51, %v6863_v62  ;;  %v6860_v21 = vand.u32 4294901760, %v5532_v63  ;;  %v5562_v26 = vsub.f32 %v235_v34, %v5475_v40 }
  0x21   : > { %6916 = vst [vmem:[#allocation6_spill] sm:$0xff] %v5544_v9  ;;  %6917 = vst [vmem:[#allocation7_spill] sm:$0xff] %v5548_v13  ;;  %v370_v27 = vand.u32 4294901760, %v369_v3  ;;  %v384_v36 = vsub.f32 %v5511_v55, %v6862_v4  ;;  %v6861_v41 = vand.u32 4294901760, %v5540_v8  ;;  %v5574_v48 = vand.u32 4294901760, %v5551_v15  ;;  %v5620_v4 = vld [vmem:[%s5384_s23 + $0xb0] sm:$0xff] }
  0x22   : > { %650 = vmatmul.mubr.f32.gmra.mrb[6].mxu1 %v5434_v23  ;;  %v5578_v34 = vand.u32 4294901760, %v5558_v20  ;;  %v376_v53 = vand.u32 4294901760, %v375_v19  ;;  %v6866_v60 = vand.u32 4294901760, %v5562_v26  ;;  %v5625_v54 = vsub.f32 %v5498_v49, %v5519_v57 }
  0x23   : > { %4795 = vmatpush3.bf16.msra.mxu0 %v6876_v0  ;;  %655 = vmatprep.mubr.f32.mxu1 %v5441_v25  ;;  %6918 = vst [vmem:[#allocation8_spill] sm:$0xff] %v5574_v48  ;;  %v385_v3 = vand.u32 4294901760, %v384_v36  ;;  %v5613_v36 = vld [vmem:[%s5384_s23 + $0xb8] sm:$0xff]  ;;  %v5657_v31 = vsub.f32 %v5528_v61, %v5548_v13  ;;  %v6926_v1 = vmov 1.0|1.0  }
  0x24   : > { %4796 = vmatprep.subr.bf16.mxu0 %v6876_v0  ;;  %6919 = vst [vmem:[#allocation9_spill] sm:$0xff] %v5578_v34  ;;  %v5638_v49 = vand.u32 4294901760, %v5613_v36  ;;  %v6880_v38 = vand.u32 4294901760, %v5625_v54 }
  0x26   : > { %657 = vmatmul.mubr.f32.gmra.mrb[8].mxu1 %v5451_v30  ;;  %6922 = vst [vmem:[#allocation12_spill] sm:$0xff] %v5638_v49 }
  0x27   : > { %4797 = vmatpush3.bf16.msra.mxu0 %v6876_v0  ;;  %662 = vmatprep.mubr.f32.mxu1 %v5459_v33 }
  0x28   : > { %4798 = vmatprep.subr.bf16.mxu0 %v6876_v0 }
  0x2a   : > { %664 = vmatmul.mubr.f32.gmra.mrb[10].mxu1 %v5475_v40 }
  0x2b   : > { %4799 = vmatpush3.bf16.msra.mxu0 %v6876_v0  ;;  %669 = vmatprep.mubr.f32.mxu1 %v5486_v44 }
  0x2c   : > { %4800 = vmatprep.subr.bf16.mxu0 %v6876_v0 }
  0x2e   : > { %332 = vmatmul.mubr.f32.vlgmr.msra.gmra.mrb[0].mxu0 %v331_v47  ;;  %671 = vmatmul.mubr.f32.gmra.mrb[12].mxu1 %v5489_v45  ;;  %v5570_v47 = vsub.f32 %v238_v35, %v5486_v44  ;;  %v390_v35 = vsub.f32 %v5532_v63, %v6860_v21  ;;  %v5602_v21 = vsub.f32 %v5492_v46, %v5515_v56 }
  0x2f   : > { %341 = vmatprep.mubr.f32.mxu0 %v340_v52  ;;  %676 = vmatprep.mubr.f32.mxu1 %v5515_v56  ;;  %v5581_v52 = vld [vmem:[%s5384_s23 + $0xa8] sm:$0xff]  ;;  %v405_v46 = vsub.f32 %v5562_v26, %v6866_v60  ;;  %v5634_v60 = vsub.f32 %v5522_v58, %v5544_v9 }
  0x30   : > { %4801 = vmatpush3.bf16.msra.mxu0 %v6876_v0  ;;  %v6867_v19 = vand.u32 4294901760, %v5570_v47 }
  0x31   : > { %4802 = vmatprep.subr.bf16.mxu0 %v6876_v0 }
  0x32   : > { %347 = vmatmul.mubr.f32.gmra.mrb[2].mxu0 %v346_v59  ;;  %678 = vmatmul.mubr.f32.gmra.mrb[14].mxu1 %v5519_v57  ;;  %v5588_v59 = vld [vmem:[%s5384_s23 + $0xa0] sm:$0xff] }
  0x33   : > { %356 = vmatprep.mubr.f32.mxu0 %v355_v2  ;;  %683 = vmatprep.mubr.f32.mxu1 %v5544_v9  ;;  %v5593_v2 = vsub.f32 %v5467_v37, %v5489_v45  ;;  %v5606_v37 = vand.u32 4294901760, %v5581_v52 }
  0x34   : > { %4803 = vmatpush3.bf16.msra.mxu0 %v6876_v0 }
  0x35   : > { %4804 = vmatprep.subr.bf16.mxu0 %v6876_v0  ;;  %6920 = vst [vmem:[#allocation10_spill] sm:$0xff] %v5606_v37  ;;  %v6872_v62 = vand.u32 4294901760, %v5593_v2 }
  0x36   : > { %362 = vmatmul.mubr.f32.gmra.mrb[4].mxu0 %v361_v16  ;;  %685 = vmatmul.mubr.f32.gmra.mrb[16].mxu1 %v5548_v13  ;;  %v399_v16 = vsub.f32 %v5540_v8, %v6861_v41  ;;  %v391_v41 = vand.u32 4294901760, %v390_v35  ;;  %v6873_v35 = vand.u32 4294901760, %v5602_v21 }
  0x37   : > { %371 = vmatprep.mubr.f32.mxu0 %v370_v27  ;;  %690 = vmatprep.mubr.f32.mxu1 %v5574_v48  ;;  %v5610_v27 = vand.u32 4294901760, %v5588_v59  ;;  %v420_v58 = vsub.f32 %v5593_v2, %v6872_v62  ;;  %v5666_v62 = vsub.f32 %v5551_v15, %v5574_v48  ;;  %v435_v15 = vsub.f32 %v5625_v54, %v6880_v38 }
  0x38   : > { %4805 = vmatpush3.bf16.msra.mxu0 %v6876_v0  ;;  %v400_v50 = vand.u32 4294901760, %v399_v16  ;;  %v5645_v16 = vld [vmem:[%s5384_s23 + $0xc8] sm:$0xff]  ;;  %v5698_v38 = vsub.f32 %v5581_v52, %v5606_v37  ;;  %v6927_v48 = vand.u32 4294901760, %v5657_v31 }
  0x39   : > { %6921 = vst [vmem:[#allocation11_spill] sm:$0xff] %v5610_v27  ;;  %4806 = vmatprep.subr.bf16.mxu0 %v6876_v0  ;;  %v5670_v61 = vand.u32 4294901760, %v5645_v16  ;;  %v5717_v13 = vsub.f32 %v5588_v59, %v5610_v27 }
  0x3a   : > { %377 = vmatmul.mubr.f32.gmra.mrb[6].mxu0 %v376_v53  ;;  %692 = vmatmul.mubr.f32.gmra.mrb[18].mxu1 %v5578_v34  ;;  %v414_v53 = vsub.f32 %v5570_v47, %v6867_v19  ;;  %v406_v19 = vand.u32 4294901760, %v405_v46  ;;  %v5689_v46 = vsub.f32 %v5558_v20, %v5578_v34  ;;  %v450_v52 = vsub.f32 %v5657_v31, %v6927_v48 }
  0x3b   : > { %386 = vmatprep.mubr.f32.mxu0 %v385_v3  ;;  %697 = vmatprep.mubr.f32.mxu1 %v5606_v37  ;;  %v5642_v3 = vand.u32 4294901760, %v5620_v4  ;;  %6924 = vst [vmem:[#allocation14_spill] sm:$0xff] %v5670_v61  ;;  %v253_v37 = vld [vmem:[%s5384_s23 + $0xe0] sm:$0xff]  ;;  %v5726_v48 = vsub.f32 %v5613_v36, %v5638_v49  ;;  %v6931_v45 = vand.u32 4294901760, %v5698_v38 }
  0x3c   : > { %4807 = vmatpush3.bf16.msra.mxu0 %v6876_v0  ;;  %v415_v28 = vand.u32 4294901760, %v414_v53  ;;  %v5677_v53 = vld [vmem:[%s5384_s23 + $0xd8] sm:$0xff]  ;;  %v5732_v59 = vand.u32 4294901760, %v253_v37 }
  0x3d   : > { %6923 = vst [vmem:[#allocation13_spill] sm:$0xff] %v5642_v3  ;;  %4808 = vmatprep.subr.bf16.mxu0 %v6876_v0  ;;  %v5702_v20 = vand.u32 4294901760, %v5677_v53 }
  0x3e   : > { %392 = vmatmul.mubr.f32.gmra.mrb[8].mxu0 %v391_v41  ;;  %699 = vmatmul.mubr.f32.gmra.mrb[20].mxu1 %v5610_v27  ;;  %v429_v41 = vsub.f32 %v5602_v21, %v6873_v35  ;;  %v421_v35 = vand.u32 4294901760, %v420_v58  ;;  %6929 = vst [vmem:[#allocation15_spill] sm:$0xff] %v5732_v59  ;;  %v255_v27 = vld [vmem:[%s5384_s23 + $0xf0] sm:$0xff] }
  0x3f   : > { %401 = vmatprep.mubr.f32.mxu0 %v400_v50  ;;  %704 = vmatprep.mubr.f32.mxu1 %v5638_v49  ;;  %v5674_v50 = vand.u32 4294901760, %v5652_v42  ;;  %v5743_v49 = vsub.f32 %v5620_v4, %v5642_v3  ;;  %v5758_v4 = vand.u32 4294901760, %v255_v27 }
  0x40   : > { %4809 = vmatpush3.bf16.msra.mxu0 %v6876_v0 }
  0x41   : > { %4810 = vmatprep.subr.bf16.mxu0 %v6876_v0  ;;  %v430_v0 = vand.u32 4294901760, %v429_v41  ;;  %v254_v41 = vld [vmem:[%s5384_s23 + $0xe8] sm:$0xff] }
  0x42   : > { %407 = vmatmul.mubr.f32.gmra.mrb[10].mxu0 %v406_v19  ;;  %706 = vmatmul.mubr.f32.gmra.mrb[22].mxu1 %v5642_v3  ;;  %v6925_v19 = vand.u32 4294901760, %v5634_v60  ;;  %v5729_v34 = vand.u32 4294901760, %v254_v41  ;;  %v6933_v3 = vand.u32 4294901760, %v5726_v48 }
  0x43   : > { %416 = vmatprep.mubr.f32.mxu0 %v415_v28  ;;  %711 = vmatprep.mubr.f32.mxu1 %v5670_v61  ;;  %v5706_v28 = vand.u32 4294901760, %v5684_v14 }
  0x44   : > { %v444_v58 = vsub.f32 %v5634_v60, %v6925_v19  ;;  %4811 = vmatpush3.bf16.msra.mxu0 %v6926_v1  ;;  %v436_v19 = vand.u32 4294901760, %v435_v15  ;;  %v489_v44 = vsub.f32 %v5726_v48, %v6933_v3 }
  0x45   : > { %4812 = vmatprep.subr.bf16.mxu0 %v6926_v1 }
  0x46   : > { %422 = vmatmul.mubr.f32.gmra.mrb[12].mxu0 %v421_v35  ;;  %713 = vmatmul.mubr.f32.gmra.mrb[24].mxu1 %v5674_v50  ;;  %v445_v9 = vand.u32 4294901760, %v444_v58  ;;  %v6928_v35 = vand.u32 4294901760, %v5666_v62  ;;  %v451_v58 = vand.u32 4294901760, %v450_v52  ;;  %v6905_v52 = vand.u32 4294901760, %v5743_v49 }
  0x47   : > { %431 = vmatprep.mubr.f32.mxu0 %v430_v0  ;;  %718 = vmatprep.mubr.f32.mxu1 %v5702_v20  ;;  %v256_v0 = vld [vmem:[%s5384_s23 + $0xf8] sm:$0xff]  ;;  %v490_v3 = vand.u32 4294901760, %v489_v44  ;;  %v5801_v44 = vsub.f32 %v253_v37, %v5732_v59 }
  0x48   : > { %v459_v15 = vsub.f32 %v5666_v62, %v6928_v35  ;;  %4813 = vmatpush3.bf16.msra.mxu0 %v6926_v1  ;;  %v6930_v35 = vand.u32 4294901760, %v5689_v46  ;;  %v5755_v36 = vand.u32 4294901760, %v256_v0 }
  0x49   : > { %4814 = vmatprep.subr.bf16.mxu0 %v6926_v1 }
  0x4a   : > { %437 = vmatmul.mubr.f32.gmra.mrb[14].mxu0 %v436_v19  ;;  %v465_v57 = vsub.f32 %v5689_v46, %v6930_v35  ;;  %720 = vmatmul.mubr.f32.gmra.mrb[26].mxu1 %v5706_v28  ;;  %v460_v56 = vand.u32 4294901760, %v459_v15  ;;  %v474_v19 = vsub.f32 %v5698_v38, %v6931_v45  ;;  %v5752_v35 = vsub.f32 %v5645_v16, %v5670_v61 }
  0x4b   : > { %446 = vmatprep.mubr.f32.mxu0 %v445_v9  ;;  %725 = vmatprep.mubr.f32.mxu1 %v5729_v34  ;;  %v6932_v45 = vand.u32 4294901760, %v5717_v13  ;;  %v5767_v16 = vsub.f32 %v5652_v42, %v5674_v50  ;;  %v495_v42 = vsub.f32 %v5743_v49, %v6905_v52 }
  0x4c   : > { %4815 = vmatpush3.bf16.msra.mxu0 %v6926_v1  ;;  %v466_v9 = vand.u32 4294901760, %v465_v57  ;;  %v475_v61 = vand.u32 4294901760, %v474_v19  ;;  %v6906_v57 = vand.u32 4294901760, %v5752_v35  ;;  %v5785_v19 = vsub.f32 %v5684_v14, %v5706_v28 }
  0x4d   : > { %4816 = vmatprep.subr.bf16.mxu0 %v6926_v1  ;;  %v480_v15 = vsub.f32 %v5717_v13, %v6932_v45  ;;  %v496_v52 = vand.u32 4294901760, %v495_v42  ;;  %v5809_v42 = vsub.f32 %v256_v0, %v5755_v36 }
  0x4e   : > { %452 = vmatmul.mubr.f32.gmra.mrb[16].mxu0 %v451_v58  ;;  %727 = vmatmul.mubr.f32.gmra.mrb[28].mxu1 %v5732_v59  ;;  %v5776_v58 = vsub.f32 %v5677_v53, %v5702_v20  ;;  %v504_v53 = vsub.f32 %v5752_v35, %v6906_v57  ;;  %v5818_v59 = vsub.f32 %v255_v27, %v5758_v4 }
  0x4f   : > { %461 = vmatprep.mubr.f32.mxu0 %v460_v56  ;;  %732 = vmatprep.mubr.f32.mxu1 %v5755_v36  ;;  %v481_v45 = vand.u32 4294901760, %v480_v15  ;;  %v6907_v56 = vand.u32 4294901760, %v5767_v16  ;;  %v5793_v15 = vsub.f32 %v254_v41, %v5729_v34 }
  0x50   : > { %v505_v57 = vand.u32 4294901760, %v504_v53  ;;  %v539_v53 = vand.u32 4294901760, %v5801_v44  ;;  %v554_v27 = vand.u32 4294901760, %v5818_v59 }
  0x51   : > { %v510_v14 = vsub.f32 %v5767_v16, %v6907_v56  ;;  %v6934_v56 = vmov 0.0  }
  0x52   : > { %467 = vmatmul.mubr.f32.gmra.mrb[18].mxu0 %v466_v9  ;;  %734 = vmatmul.mubr.f32.gmra.mrb[30].mxu1 %v5758_v4  ;;  %v6910_v9 = vand.u32 4294901760, %v5776_v58 }
  0x53   : > { %476 = vmatprep.mubr.f32.mxu0 %v475_v61  ;;  %805 = vmatprep.mubr.f32.mxu1 %v5401_v10  ;;  %v524_v61 = vand.u32 4294901760, %v5785_v19  ;;  %v511_v37 = vand.u32 4294901760, %v510_v14  ;;  %v540_v14 = vsub.f32 %v5801_v44, %v539_v53 }
  0x54   : > { %v519_v41 = vsub.f32 %v5776_v58, %v6910_v9 }
  0x56   : > { %482 = vmatmul.mubr.f32.gmra.mrb[20].mxu0 %v481_v45  ;;  %808 = vmatmul.mubr.f32.vlgmr.msra.gmra.mrb[32].mxu1 %v5430_v22  ;;  %v6911_v45 = vand.u32 4294901760, %v5793_v15  ;;  %v520_v0 = vand.u32 4294901760, %v519_v41 }
  0x57   : > { %491 = vmatprep.mubr.f32.mxu0 %v490_v3  ;;  %814 = vmatprep.mubr.f32.mxu1 %v5437_v24  ;;  %v525_v3 = vsub.f32 %v5785_v19, %v524_v61 }
  0x58   : > { %1190 = vmatpush1.msra.mxu1 %v6934_v56  ;;  %v534_v9 = vsub.f32 %v5793_v15, %v6911_v45  ;;  %v541_v45 = vand.u32 4294901760, %v540_v14  ;;  %v6938_v14 = vand.u32 4294901760, %v5447_v29 }
  0x59   : > { %v526_v56 = vand.u32 4294901760, %v525_v3 }
  0x5a   : > { %497 = vmatmul.mubr.f32.gmra.mrb[22].mxu0 %v496_v52  ;;  %817 = vmatmul.mubr.f32.gmra.mrb[34].mxu1 %v5447_v29  ;;  %v548_v52 = vand.u32 4294901760, %v5809_v42  ;;  %v6942_v29 = vand.u32 4294901760, %v5502_v51 }
  0x5b   : > { %506 = vmatprep.mubr.f32.mxu0 %v505_v57  ;;  %823 = vmatprep.mubr.f32.mxu1 %v5455_v32  ;;  %v535_v57 = vand.u32 4294901760, %v534_v9 }
  0x5c   : > { %v549_v41 = vsub.f32 %v5809_v42, %v548_v52 }
  0x5e   : > { %512 = vmatmul.mubr.f32.gmra.mrb[24].mxu0 %v511_v37  ;;  %826 = vmatmul.mubr.f32.gmra.mrb[36].mxu1 %v5471_v39  ;;  %v555_v37 = vsub.f32 %v5818_v59, %v554_v27  ;;  %v550_v3 = vand.u32 4294901760, %v549_v41 }
  0x5f   : > { %521 = vmatprep.mubr.f32.mxu0 %v520_v0  ;;  %832 = vmatprep.mubr.f32.mxu1 %v5482_v43  ;;  %v6935_v0 = vand.u32 4294901760, %v5401_v10  ;;  %v6939_v10 = vand.u32 4294901760, %v5455_v32  ;;  %v6943_v32 = vand.u32 4294901760, %v5511_v55 }
  0x60   : > { %v556_v9 = vand.u32 4294901760, %v555_v37 }
  0x62   : > { %527 = vmatmul.mubr.f32.gmra.mrb[26].mxu0 %v526_v56  ;;  %835 = vmatmul.mubr.f32.gmra.mrb[38].mxu1 %v5502_v51  ;;  %v6936_v56 = vand.u32 4294901760, %v5430_v22  ;;  %v6940_v22 = vand.u32 4294901760, %v5471_v39  ;;  %v6944_v39 = vand.u32 4294901760, %v5532_v63  ;;  %v6946_v51 = vand.u32 4294901760, %v5562_v26 }
  0x63   : > { %536 = vmatprep.mubr.f32.mxu0 %v535_v57  ;;  %841 = vmatprep.mubr.f32.mxu1 %v5511_v55  ;;  %v6947_v55 = vand.u32 4294901760, %v5570_v47 }
  0x66   : > { %542 = vmatmul.mubr.f32.gmra.mrb[28].mxu0 %v541_v45  ;;  %844 = vmatmul.mubr.f32.gmra.mrb[40].mxu1 %v5532_v63  ;;  %v6937_v45 = vand.u32 4294901760, %v5437_v24  ;;  %v6941_v24 = vand.u32 4294901760, %v5482_v43  ;;  %v6945_v43 = vand.u32 4294901760, %v5540_v8  ;;  %v6948_v63 = vand.u32 4294901760, %v5593_v2 }
  0x67   : > { %551 = vmatprep.mubr.f32.mxu0 %v550_v3  ;;  %850 = vmatprep.mubr.f32.mxu1 %v5540_v8  ;;  %v6949_v8 = vand.u32 4294901760, %v5602_v21 }
  0x6a   : > { %557 = vmatmul.mubr.f32.gmra.mrb[30].mxu0 %v556_v9  ;;  %853 = vmatmul.mubr.f32.gmra.mrb[42].mxu1 %v5562_v26  ;;  %v6950_v26 = vand.u32 4294901760, %v5625_v54 }
  0x6b   : > { %1015 = vmatprep.mubr.f32.mxu0 %v6935_v0  ;;  %859 = vmatprep.mubr.f32.mxu1 %v5570_v47  ;;  %v6951_v47 = vand.u32 4294901760, %v5634_v60 }
  0x6e   : > { %1019 = vmatmul.mubr.f32.vlgmr.msra.gmra.mrb[32].mxu0 %v6936_v56  ;;  %862 = vmatmul.mubr.f32.gmra.mrb[44].mxu1 %v5593_v2  ;;  %v6953_v2 = vand.u32 4294901760, %v5666_v62 }
  0x6f   : > { %1026 = vmatprep.mubr.f32.mxu0 %v6937_v45  ;;  %868 = vmatprep.mubr.f32.mxu1 %v5602_v21  ;;  %v6952_v21 = vand.u32 4294901760, %v5657_v31 }
  0x70   : > { %4817 = vmatpush3.bf16.msra.mxu0 %v6926_v1 }
  0x71   : > { %4818 = vmatprep.subr.bf16.mxu0 %v6926_v1 }
  0x72   : > { %1030 = vmatmul.mubr.f32.gmra.mrb[34].mxu0 %v6938_v14  ;;  %871 = vmatmul.mubr.f32.gmra.mrb[46].mxu1 %v5625_v54  ;;  %v6954_v54 = vand.u32 4294901760, %v5689_v46 }
  0x73   : > { %1037 = vmatprep.mubr.f32.mxu0 %v6939_v10  ;;  %877 = vmatprep.mubr.f32.mxu1 %v5634_v60  ;;  %v6955_v60 = vand.u32 4294901760, %v5698_v38 }
  0x74   : > { %4819 = vmatpush3.bf16.msra.mxu0 %v6926_v1 }
  0x75   : > { %4820 = vmatprep.subr.bf16.mxu0 %v6926_v1 }
  0x76   : > { %1041 = vmatmul.mubr.f32.gmra.mrb[36].mxu0 %v6940_v22  ;;  %880 = vmatmul.mubr.f32.gmra.mrb[48].mxu1 %v5657_v31  ;;  %v6957_v31 = vand.u32 4294901760, %v5726_v48 }
  0x77   : > { %1048 = vmatprep.mubr.f32.mxu0 %v6941_v24  ;;  %886 = vmatprep.mubr.f32.mxu1 %v5666_v62  ;;  %v6958_v62 = vand.u32 4294901760, %v5743_v49 }
  0x78   : > { %4821 = vmatpush3.bf16.msra.mxu0 %v6926_v1 }
  0x79   : > { %4822 = vmatprep.subr.bf16.mxu0 %v6926_v1 }
  0x7a   : > { %1052 = vmatmul.mubr.f32.gmra.mrb[38].mxu0 %v6942_v29  ;;  %889 = vmatmul.mubr.f32.gmra.mrb[50].mxu1 %v5689_v46  ;;  %v6961_v46 = vand.u32 4294901760, %v5776_v58 }
  0x7b   : > { %1059 = vmatprep.mubr.f32.mxu0 %v6943_v32  ;;  %895 = vmatprep.mubr.f32.mxu1 %v5698_v38  ;;  %v6959_v38 = vand.u32 4294901760, %v5752_v35 }
  0x7c   : > { %4823 = vmatpush3.bf16.msra.mxu0 %v6926_v1 }
  0x7d   : > { %4824 = vmatprep.subr.bf16.mxu0 %v6926_v1 }
  0x7e   : > { %1063 = vmatmul.mubr.f32.gmra.mrb[40].mxu0 %v6944_v39  ;;  %898 = vmatmul.mubr.f32.gmra.mrb[52].mxu1 %v5717_v13 }
  0x7f   : > { %1070 = vmatprep.mubr.f32.mxu0 %v6945_v43  ;;  %904 = vmatprep.mubr.f32.mxu1 %v5726_v48  ;;  %v6963_v48 = vld [vmem:[#allocation2_spill] sm:$0xff] }
  0x80   : > { %4825 = vmatpush3.bf16.msra.mxu0 %v6926_v1 }
  0x81   : > { %4826 = vmatprep.subr.bf16.mxu0 %v6926_v1 }
  0x82   : > { %1074 = vmatmul.mubr.f32.gmra.mrb[42].mxu0 %v6946_v51  ;;  %907 = vmatmul.mubr.f32.gmra.mrb[54].mxu1 %v5743_v49  ;;  %v6962_v49 = vand.u32 4294901760, %v5793_v15 }
  0x83   : > { %1081 = vmatprep.mubr.f32.mxu0 %v6947_v55  ;;  %913 = vmatprep.mubr.f32.mxu1 %v5752_v35  ;;  %v6964_v35 = vld [vmem:[#allocation3_spill] sm:$0xff] }
  0x84   : > { %4827 = vmatpush3.bf16.msra.mxu0 %v6926_v1 }
  0x85   : > { %4828 = vmatprep.subr.bf16.mxu0 %v6926_v1 }
  0x86   : > { %1085 = vmatmul.mubr.f32.gmra.mrb[44].mxu0 %v6948_v63  ;;  %916 = vmatmul.mubr.f32.gmra.mrb[56].mxu1 %v5767_v16 }
  0x87   : > { %1092 = vmatprep.mubr.f32.mxu0 %v6949_v8  ;;  %922 = vmatprep.mubr.f32.mxu1 %v5776_v58  ;;  %v6966_v58 = vld [vmem:[#allocation5_spill] sm:$0xff] }
  0x88   : > { %4829 = vmatpush3.bf16.msra.mxu0 %v6926_v1 }
  0x89   : > { %4830 = vmatprep.subr.bf16.mxu0 %v6926_v1 }
  0x8a   : > { %1096 = vmatmul.mubr.f32.gmra.mrb[46].mxu0 %v6950_v26  ;;  %925 = vmatmul.mubr.f32.gmra.mrb[58].mxu1 %v5785_v19 }
  0x8b   : > { %1103 = vmatprep.mubr.f32.mxu0 %v6951_v47  ;;  %931 = vmatprep.mubr.f32.mxu1 %v5793_v15 }
  0x8c   : > { %4831 = vmatpush3.bf16.msra.mxu0 %v6926_v1  ;;  %v6956_v1 = vand.u32 4294901760, %v5717_v13  ;;  %v6960_v13 = vand.u32 4294901760, %v5767_v16  ;;  %v6965_v16 = vld [vmem:[#allocation4_spill] sm:$0xff] }
  0x8e   : > { %1107 = vmatmul.mubr.f32.gmra.mrb[48].mxu0 %v6952_v21  ;;  %934 = vmatmul.mubr.f32.gmra.mrb[60].mxu1 %v5801_v44 }
  0x8f   : > { %1114 = vmatprep.mubr.f32.mxu0 %v6953_v2  ;;  %940 = vmatprep.mubr.f32.mxu1 %v5809_v42 }
  0x92   : > { %1118 = vmatmul.mubr.f32.gmra.mrb[50].mxu0 %v6954_v54  ;;  %943 = vmatmul.mubr.f32.gmra.mrb[62].mxu1 %v5818_v59  ;;  %v6967_v59 = vld [vmem:[#allocation6_spill] sm:$0xff] }
  0x93   : > { %1125 = vmatprep.mubr.f32.mxu0 %v6955_v60  ;;  %1254 = vmatprep.mubr.f32.mxu1 %v5391_v5 }
  0x96   : > { %1129 = vmatmul.mubr.f32.gmra.mrb[52].mxu0 %v6956_v1  ;;  %1256 = vmatmul.mubr.f32.vlgmr.msra.gmra.mrb[64].mxu1 %v5393_v6 }
  0x97   : > { %1136 = vmatprep.mubr.f32.mxu0 %v6957_v31  ;;  %1261 = vmatprep.mubr.f32.mxu1 %v5395_v7 }
  0x9a   : > { %1140 = vmatmul.mubr.f32.gmra.mrb[54].mxu0 %v6958_v62  ;;  %1263 = vmatmul.mubr.f32.gmra.mrb[66].mxu1 %v5405_v11 }
  0x9b   : > { %1147 = vmatprep.mubr.f32.mxu0 %v6959_v38  ;;  %1268 = vmatprep.mubr.f32.mxu1 %v5409_v12 }
  0x9e   : > { %1151 = vmatmul.mubr.f32.gmra.mrb[56].mxu0 %v6960_v13  ;;  %1270 = vmatmul.mubr.f32.gmra.mrb[68].mxu1 %v5421_v17 }
  0x9f   : > { %1158 = vmatprep.mubr.f32.mxu0 %v6961_v46  ;;  %1275 = vmatprep.mubr.f32.mxu1 %v5425_v18 }
  0xa2   : > { %1162 = vmatmul.mubr.f32.gmra.mrb[58].mxu0 %v524_v61  ;;  %1277 = vmatmul.mubr.f32.gmra.mrb[70].mxu1 %v5434_v23 }
  0xa3   : > { %1169 = vmatprep.mubr.f32.mxu0 %v6962_v49  ;;  %1282 = vmatprep.mubr.f32.mxu1 %v5441_v25 }
  0xa6   : > { %1173 = vmatmul.mubr.f32.gmra.mrb[60].mxu0 %v539_v53  ;;  %1284 = vmatmul.mubr.f32.gmra.mrb[72].mxu1 %v5451_v30 }
  0xa7   : > { %1180 = vmatprep.mubr.f32.mxu0 %v548_v52  ;;  %1289 = vmatprep.mubr.f32.mxu1 %v5459_v33 }
  0xaa   : > { %1184 = vmatmul.mubr.f32.gmra.mrb[62].mxu0 %v554_v27  ;;  %1291 = vmatmul.mubr.f32.gmra.mrb[74].mxu1 %v5475_v40 }
  0xab   : > { %1431 = vmatprep.mubr.f32.mxu0 %v5391_v5  ;;  %1296 = vmatprep.mubr.f32.mxu1 %v6963_v48  ;;  %v6968_v5 = vld [vmem:[#allocation7_spill] sm:$0xff] }
  0xae   : > { %1433 = vmatmul.mubr.f32.vlgmr.msra.gmra.mrb[64].mxu0 %v5393_v6  ;;  %1298 = vmatmul.mubr.f32.gmra.mrb[76].mxu1 %v6964_v35  ;;  %v6969_v6 = vld [vmem:[#allocation8_spill] sm:$0xff] }
  0xaf   : > { %1438 = vmatprep.mubr.f32.mxu0 %v5395_v7  ;;  %1303 = vmatprep.mubr.f32.mxu1 %v6965_v16  ;;  %v6970_v7 = vld [vmem:[#allocation9_spill] sm:$0xff] }
  0xb2   : > { %1440 = vmatmul.mubr.f32.gmra.mrb[66].mxu0 %v5405_v11  ;;  %1305 = vmatmul.mubr.f32.gmra.mrb[78].mxu1 %v6966_v58  ;;  %v6971_v11 = vld [vmem:[#allocation10_spill] sm:$0xff] }
  0xb3   : > { %1445 = vmatprep.mubr.f32.mxu0 %v5409_v12  ;;  %1310 = vmatprep.mubr.f32.mxu1 %v6967_v59  ;;  %v6972_v12 = vld [vmem:[#allocation11_spill] sm:$0xff] }
  0xb6   : > { %1447 = vmatmul.mubr.f32.gmra.mrb[68].mxu0 %v5421_v17  ;;  %1312 = vmatmul.mubr.f32.gmra.mrb[80].mxu1 %v6968_v5  ;;  %v6973_v17 = vld [vmem:[#allocation12_spill] sm:$0xff] }
  0xb7   : > { %1452 = vmatprep.mubr.f32.mxu0 %v5425_v18  ;;  %1317 = vmatprep.mubr.f32.mxu1 %v6969_v6  ;;  %v6974_v18 = vld [vmem:[#allocation13_spill] sm:$0xff] }
  0xba   : > { %1454 = vmatmul.mubr.f32.gmra.mrb[70].mxu0 %v5434_v23  ;;  %1319 = vmatmul.mubr.f32.gmra.mrb[82].mxu1 %v6970_v7  ;;  %v6975_v23 = vld [vmem:[#allocation14_spill] sm:$0xff] }
  0xbb   : > { %1459 = vmatprep.mubr.f32.mxu0 %v5441_v25  ;;  %1324 = vmatprep.mubr.f32.mxu1 %v6971_v11  ;;  %v6976_v25 = vld [vmem:[#allocation15_spill] sm:$0xff] }
  0xbe   : > { %1461 = vmatmul.mubr.f32.gmra.mrb[72].mxu0 %v5451_v30  ;;  %1326 = vmatmul.mubr.f32.gmra.mrb[84].mxu1 %v6972_v12 }
  0xbf   : > { %1466 = vmatprep.mubr.f32.mxu0 %v5459_v33  ;;  %1331 = vmatprep.mubr.f32.mxu1 %v6973_v17 }
  0xc2   : > { %1468 = vmatmul.mubr.f32.gmra.mrb[74].mxu0 %v5475_v40  ;;  %1333 = vmatmul.mubr.f32.gmra.mrb[86].mxu1 %v6974_v18 }
  0xc3   : > { %1473 = vmatprep.mubr.f32.mxu0 %v6963_v48  ;;  %1338 = vmatprep.mubr.f32.mxu1 %v6975_v23 }
  0xc6   : > { %1475 = vmatmul.mubr.f32.gmra.mrb[76].mxu0 %v6964_v35  ;;  %1340 = vmatmul.mubr.f32.gmra.mrb[88].mxu1 %v5674_v50 }
  0xc7   : > { %1480 = vmatprep.mubr.f32.mxu0 %v6965_v16  ;;  %1345 = vmatprep.mubr.f32.mxu1 %v5702_v20 }
  0xca   : > { %1482 = vmatmul.mubr.f32.gmra.mrb[78].mxu0 %v6966_v58  ;;  %1347 = vmatmul.mubr.f32.gmra.mrb[90].mxu1 %v5706_v28 }
  0xcb   : > { %1487 = vmatprep.mubr.f32.mxu0 %v6967_v59  ;;  %1352 = vmatprep.mubr.f32.mxu1 %v5729_v34 }
  0xce   : > { %1489 = vmatmul.mubr.f32.gmra.mrb[80].mxu0 %v6968_v5  ;;  %1354 = vmatmul.mubr.f32.gmra.mrb[92].mxu1 %v6976_v25 }
  0xcf   : > { %1494 = vmatprep.mubr.f32.mxu0 %v6969_v6  ;;  %1359 = vmatprep.mubr.f32.mxu1 %v5755_v36 }
  0xd2   : > { %1496 = vmatmul.mubr.f32.gmra.mrb[82].mxu0 %v6970_v7  ;;  %1361 = vmatmul.mubr.f32.gmra.mrb[94].mxu1 %v5758_v4 }
  0xd3   : > { %1501 = vmatprep.mubr.f32.mxu0 %v6971_v11 }
  0xd6   : > { %1503 = vmatmul.mubr.f32.gmra.mrb[84].mxu0 %v6972_v12 }
  0xd7   : > { %1508 = vmatprep.mubr.f32.mxu0 %v6973_v17 }
  0xda   : > { %1510 = vmatmul.mubr.f32.gmra.mrb[86].mxu0 %v6974_v18 }
  0xdb   : > { %1515 = vmatprep.mubr.f32.mxu0 %v6975_v23 }
  0xde   : > { %1517 = vmatmul.mubr.f32.gmra.mrb[88].mxu0 %v5674_v50 }
  0xdf   : > { %1522 = vmatprep.mubr.f32.mxu0 %v5702_v20 }
  0xe2   : > { %1524 = vmatmul.mubr.f32.gmra.mrb[90].mxu0 %v5706_v28 }
  0xe3   : > { %1529 = vmatprep.mubr.f32.mxu0 %v5729_v34 }
  0xe6   : > { %1531 = vmatmul.mubr.f32.gmra.mrb[92].mxu0 %v6976_v25 }
  0xe7   : > { %1536 = vmatprep.mubr.f32.mxu0 %v5755_v36 }
  0xe9   : > { %v630_v30 = vpop.f32.mrb[0].mxu1 }
  0xea   : > { %1538 = vmatmul.mubr.f32.gmra.mrb[94].mxu0 %v5758_v4  ;;  %v632_v33 = vpop.f32.mrb[1].mxu1 }
  0xed   : > { %v637_v40 = vpop.f32.mrb[2].mxu1 }
  0xee   : > { %v639_v19 = vpop.f32.mrb[3].mxu1 }
  0xf1   : > { %v644_v15 = vpop.f32.mrb[4].mxu1 }
  0xf2   : > { %v646_v61 = vpop.f32.mrb[5].mxu1 }
  0xf5   : > { %v651_v44 = vpop.f32.mrb[6].mxu1 }
  0xf6   : > { %v653_v50 = vpop.f32.mrb[7].mxu1 }
  0xf9   : > { %v658_v42 = vpop.f32.mrb[8].mxu1 }
  0xfa   : > { %v660_v20 = vpop.f32.mrb[9].mxu1 }
  0xfd   : > { %v665_v53 = vpop.f32.mrb[10].mxu1 }
  0xfe   : > { %v667_v28 = vpop.f32.mrb[11].mxu1 }
 0x101   : > { %v3916_v52 = vpop.f32.mrb[0].mxu0  ;;  %v672_v27 = vpop.f32.mrb[12].mxu1 }
 0x102   : > { %v3917_v34 = vpop.f32.mrb[1].mxu0  ;;  %v674_v41 = vpop.f32.mrb[13].mxu1 }
 0x103   : > { %v3918_v57 = vadd.f32 %v3917_v34, %v3916_v52 }
 0x105   : > { %v3919_v36 = vpop.f32.mrb[2].mxu0  ;;  %v631_v37 = vadd.f32 %v3918_v57, %v630_v30  ;;  %v679_v3 = vpop.f32.mrb[14].mxu1 }
 0x106   : > { %v3920_v4 = vpop.f32.mrb[3].mxu0  ;;  %v681_v0 = vpop.f32.mrb[15].mxu1 }
 0x107   : > { %v3921_v9 = vadd.f32 %v3920_v4, %v3919_v36 }
 0x109   : > { %v3922_v56 = vpop.f32.mrb[4].mxu0  ;;  %v638_v45 = vadd.f32 %v3921_v9, %v637_v40  ;;  %v686_v10 = vpop.f32.mrb[16].mxu1 }
 0x10a   : > { %v3923_v14 = vpop.f32.mrb[5].mxu0  ;;  %v688_v24 = vpop.f32.mrb[17].mxu1 }
 0x10b   : > { %v3924_v22 = vadd.f32 %v3923_v14, %v3922_v56 }
 0x10d   : > { %v3925_v29 = vpop.f32.mrb[6].mxu0  ;;  %v645_v32 = vadd.f32 %v3924_v22, %v644_v15  ;;  %v693_v43 = vpop.f32.mrb[18].mxu1 }
 0x10e   : > { %v3926_v39 = vpop.f32.mrb[7].mxu0  ;;  %v695_v55 = vpop.f32.mrb[19].mxu1 }
 0x10f   : > { %v3927_v51 = vadd.f32 %v3926_v39, %v3925_v29 }
 0x111   : > { %v3928_v63 = vpop.f32.mrb[8].mxu0  ;;  %v652_v8 = vadd.f32 %v3927_v51, %v651_v44  ;;  %v700_v47 = vpop.f32.mrb[20].mxu1 }
 0x112   : > { %v3929_v26 = vpop.f32.mrb[9].mxu0  ;;  %v702_v2 = vpop.f32.mrb[21].mxu1 }
 0x113   : > { %v3930_v21 = vadd.f32 %v3929_v26, %v3928_v63 }
 0x115   : > { %v3931_v54 = vpop.f32.mrb[10].mxu0  ;;  %v659_v60 = vadd.f32 %v3930_v21, %v658_v42  ;;  %v707_v31 = vpop.f32.mrb[22].mxu1 }
 0x116   : > { %v3932_v1 = vpop.f32.mrb[11].mxu0  ;;  %v709_v38 = vpop.f32.mrb[23].mxu1 }
 0x117   : > { %v3933_v62 = vadd.f32 %v3932_v1, %v3931_v54 }
 0x119   : > { %v3934_v13 = vpop.f32.mrb[12].mxu0  ;;  %v6006_v46 = vadd.f32 %v3933_v62, %v665_v53  ;;  %v714_v48 = vpop.f32.mrb[24].mxu1 }
 0x11a   : > { %v3935_v49 = vpop.f32.mrb[13].mxu0  ;;  %v716_v16 = vpop.f32.mrb[25].mxu1 }
 0x11b   : > { %v3936_v35 = vadd.f32 %v3935_v49, %v3934_v13 }
 0x11d   : > { %v3937_v58 = vpop.f32.mrb[14].mxu0  ;;  %v6008_v59 = vadd.f32 %v3936_v35, %v672_v27  ;;  %v721_v6 = vpop.f32.mrb[26].mxu1 }
 0x11e   : > { %v3938_v5 = vpop.f32.mrb[15].mxu0  ;;  %v723_v11 = vpop.f32.mrb[27].mxu1 }
 0x11f   : > { %v3939_v7 = vadd.f32 %v3938_v5, %v3937_v58 }
 0x121   : > { %v3940_v12 = vpop.f32.mrb[16].mxu0  ;;  %v6010_v17 = vadd.f32 %v3939_v7, %v679_v3  ;;  %v728_v23 = vpop.f32.mrb[28].mxu1 }
 0x122   : > { %v3941_v18 = vpop.f32.mrb[17].mxu0  ;;  %v730_v30 = vpop.f32.mrb[29].mxu1 }
 0x123   : > { %v3942_v25 = vadd.f32 %v3941_v18, %v3940_v12 }
 0x125   : > { %v3943_v33 = vpop.f32.mrb[18].mxu0  ;;  %v6012_v40 = vadd.f32 %v3942_v25, %v686_v10  ;;  %v735_v15 = vpop.f32.mrb[30].mxu1 }
 0x126   : > { %v3944_v19 = vpop.f32.mrb[19].mxu0  ;;  %v737_v44 = vpop.f32.mrb[31].mxu1 }
 0x127   : > { %v3945_v61 = vadd.f32 %v3944_v19, %v3943_v33 }
 0x129   : > { %v3946_v50 = vpop.f32.mrb[20].mxu0  ;;  %v6014_v42 = vadd.f32 %v3945_v61, %v693_v43  ;;  %v809_v53 = vpop.f32.mrb[32].mxu1 }
 0x12a   : > { %v3947_v20 = vpop.f32.mrb[21].mxu0  ;;  %v810_v52 = vadd.f32 %v809_v53, %v631_v37  ;;  %v811_v34 = vpop.f32.mrb[33].mxu1 }
 0x12b   : > { %v3948_v28 = vadd.f32 %v3947_v20, %v3946_v50 }
 0x12d   : > { %v3949_v27 = vpop.f32.mrb[22].mxu0  ;;  %v6016_v57 = vadd.f32 %v3948_v28, %v700_v47  ;;  %v818_v36 = vpop.f32.mrb[34].mxu1 }
 0x12e   : > { %v3950_v41 = vpop.f32.mrb[23].mxu0  ;;  %v819_v3 = vadd.f32 %v818_v36, %v638_v45  ;;  %v820_v9 = vpop.f32.mrb[35].mxu1 }
 0x12f   : > { %v3951_v4 = vadd.f32 %v3950_v41, %v3949_v27 }
 0x131   : > { %v3952_v0 = vpop.f32.mrb[24].mxu0  ;;  %v6018_v56 = vadd.f32 %v3951_v4, %v707_v31  ;;  %v827_v10 = vpop.f32.mrb[36].mxu1 }
 0x132   : > { %v3953_v14 = vpop.f32.mrb[25].mxu0  ;;  %v828_v24 = vadd.f32 %v827_v10, %v645_v32  ;;  %v829_v29 = vpop.f32.mrb[37].mxu1 }
 0x133   : > { %v3954_v22 = vadd.f32 %v3953_v14, %v3952_v0 }
 0x135   : > { %v3955_v39 = vpop.f32.mrb[26].mxu0  ;;  %v6020_v43 = vadd.f32 %v3954_v22, %v714_v48  ;;  %v836_v51 = vpop.f32.mrb[38].mxu1 }
 0x136   : > { %v3956_v37 = vpop.f32.mrb[27].mxu0  ;;  %v837_v63 = vadd.f32 %v836_v51, %v652_v8  ;;  %v838_v26 = vpop.f32.mrb[39].mxu1 }
 0x137   : > { %v3957_v55 = vadd.f32 %v3956_v37, %v3955_v39 }
 0x139   : > { %v3958_v47 = vpop.f32.mrb[28].mxu0  ;;  %v6022_v21 = vadd.f32 %v3957_v55, %v721_v6  ;;  %v845_v2 = vpop.f32.mrb[40].mxu1 }
 0x13a   : > { %v3959_v45 = vpop.f32.mrb[29].mxu0  ;;  %v846_v1 = vadd.f32 %v845_v2, %v659_v60  ;;  %v847_v31 = vpop.f32.mrb[41].mxu1  ;;  %v1559_v60 = vld [vmem:[%s6855_s1] sm:$0xff] }
 0x13b   : > { %v3960_v54 = vadd.f32 %v3959_v45, %v3958_v47  ;;  %v6033_v12 = vand.u32 4294901760, %v1559_v60 }
 0x13d   : > { %v3961_v62 = vpop.f32.mrb[30].mxu0  ;;  %v6024_v38 = vadd.f32 %v3960_v54, %v728_v23  ;;  %v854_v13 = vpop.f32.mrb[42].mxu1  ;;  %v6038_v30 = vsub.f32 %v1559_v60, %v6033_v12 }
 0x13e   : > { %v3962_v32 = vpop.f32.mrb[31].mxu0  ;;  %v855_v48 = vadd.f32 %v854_v13, %v6006_v46  ;;  %v856_v35 = vpop.f32.mrb[43].mxu1 }
 0x13f   : > { %v3963_v49 = vadd.f32 %v3962_v32, %v3961_v62 }
 0x141   : > { %v3996_v16 = vpop.f32.mrb[32].mxu0  ;;  %v6027_v8 = vadd.f32 %v3963_v49, %v735_v15  ;;  %v863_v58 = vpop.f32.mrb[44].mxu1  ;;  %v1650_v15 = vand.u32 4294901760, %v6038_v30 }
 0x142   : > { %v3997_v5 = vpop.f32.mrb[33].mxu0  ;;  %v864_v6 = vadd.f32 %v863_v58, %v6008_v59  ;;  %v865_v11 = vpop.f32.mrb[45].mxu1 }
 0x143   : > { %v3998_v7 = vadd.f32 %v3997_v5, %v3996_v16  ;;  %v1651_v53 = vsub.f32 %v6038_v30, %v1650_v15 }
 0x145   : > { %v3999_v18 = vpop.f32.mrb[34].mxu0  ;;  %v6035_v23 = vadd.f32 %v3998_v7, %v810_v52  ;;  %v872_v46 = vpop.f32.mrb[46].mxu1  ;;  %v1652_v27 = vand.u32 4294901760, %v1651_v53 }
 0x146   : > { %v4000_v25 = vpop.f32.mrb[35].mxu0  ;;  %v873_v33 = vadd.f32 %v872_v46, %v6010_v17  ;;  %v874_v59 = vpop.f32.mrb[47].mxu1 }
 0x147   : > { %v4001_v19 = vadd.f32 %v4000_v25, %v3999_v18  ;;  %4396 = vmatprep.mubr.f32.mxu1 %v1652_v27 }
 0x149   : > { %v4002_v61 = vpop.f32.mrb[36].mxu0  ;;  %v6042_v44 = vadd.f32 %v4001_v19, %v819_v3  ;;  %v881_v50 = vpop.f32.mrb[48].mxu1 }
 0x14a   : > { %v4003_v20 = vpop.f32.mrb[37].mxu0  ;;  %v882_v28 = vadd.f32 %v881_v50, %v6012_v40  ;;  %v883_v34 = vpop.f32.mrb[49].mxu1 }
 0x14b   : > { %v4004_v52 = vadd.f32 %v4003_v20, %v4002_v61 }
 0x14d   : > { %v4005_v41 = vpop.f32.mrb[38].mxu0  ;;  %v6048_v17 = vadd.f32 %v4004_v52, %v828_v24  ;;  %v890_v36 = vpop.f32.mrb[50].mxu1 }
 0x14e   : > { %v4006_v4 = vpop.f32.mrb[39].mxu0  ;;  %v891_v3 = vadd.f32 %v890_v36, %v6014_v42  ;;  %v892_v0 = vpop.f32.mrb[51].mxu1 }
 0x14f   : > { %v4007_v9 = vadd.f32 %v4006_v4, %v4005_v41 }
 0x151   : > { %v4008_v14 = vpop.f32.mrb[40].mxu0  ;;  %v6051_v10 = vadd.f32 %v4007_v9, %v837_v63  ;;  %v899_v22 = vpop.f32.mrb[52].mxu1 }
 0x152   : > { %v4009_v29 = vpop.f32.mrb[41].mxu0  ;;  %v900_v40 = vadd.f32 %v899_v22, %v6016_v57  ;;  %v901_v37 = vpop.f32.mrb[53].mxu1 }
 0x153   : > { %v4010_v39 = vadd.f32 %v4009_v29, %v4008_v14 }
 0x155   : > { %v4011_v51 = vpop.f32.mrb[42].mxu0  ;;  %v6054_v55 = vadd.f32 %v4010_v39, %v846_v1  ;;  %v908_v24 = vpop.f32.mrb[54].mxu1 }
 0x156   : > { %v4012_v26 = vpop.f32.mrb[43].mxu0  ;;  %v909_v47 = vadd.f32 %v908_v24, %v6018_v56  ;;  %v910_v42 = vpop.f32.mrb[55].mxu1 }
 0x157   : > { %v4013_v45 = vadd.f32 %v4012_v26, %v4011_v51 }
 0x159   : > { %v4014_v2 = vpop.f32.mrb[44].mxu0  ;;  %v6057_v54 = vadd.f32 %v4013_v45, %v855_v48  ;;  %v917_v63 = vpop.f32.mrb[56].mxu1 }
 0x15a   : > { %v4015_v31 = vpop.f32.mrb[45].mxu0  ;;  %v918_v62 = vadd.f32 %v917_v63, %v6020_v43  ;;  %v919_v57 = vpop.f32.mrb[57].mxu1 }
 0x15b   : > { %v4016_v32 = vadd.f32 %v4015_v31, %v4014_v2 }
 0x15d   : > { %v4017_v13 = vpop.f32.mrb[46].mxu0  ;;  %v6060_v49 = vadd.f32 %v4016_v32, %v864_v6  ;;  %v926_v1 = vpop.f32.mrb[58].mxu1 }
 0x15e   : > { %v4018_v35 = vpop.f32.mrb[47].mxu0  ;;  %v927_v16 = vadd.f32 %v926_v1, %v6022_v21  ;;  %v928_v56 = vpop.f32.mrb[59].mxu1 }
 0x15f   : > { %v4019_v58 = vadd.f32 %v4018_v35, %v4017_v13 }
 0x161   : > { %v4020_v5 = vpop.f32.mrb[48].mxu0  ;;  %v6063_v7 = vadd.f32 %v4019_v58, %v873_v33  ;;  %v935_v48 = vpop.f32.mrb[60].mxu1 }
 0x162   : > { %v4021_v11 = vpop.f32.mrb[49].mxu0  ;;  %v936_v60 = vadd.f32 %v935_v48, %v6024_v38  ;;  %v937_v43 = vpop.f32.mrb[61].mxu1 }
 0x163   : > { %v4022_v18 = vadd.f32 %v4021_v11, %v4020_v5 }
 0x165   : > { %v4023_v46 = vpop.f32.mrb[50].mxu0  ;;  %v6066_v25 = vadd.f32 %v4022_v18, %v882_v28  ;;  %v944_v6 = vpop.f32.mrb[62].mxu1 }
 0x166   : > { %v4024_v19 = vpop.f32.mrb[51].mxu0  ;;  %v945_v59 = vadd.f32 %v944_v6, %v6027_v8  ;;  %v946_v21 = vpop.f32.mrb[63].mxu1 }
 0x167   : > { %v4025_v61 = vadd.f32 %v4024_v19, %v4023_v46 }
 0x169   : > { %v4026_v50 = vpop.f32.mrb[52].mxu0  ;;  %v6069_v20 = vadd.f32 %v4025_v61, %v891_v3  ;;  %v1257_v53 = vpop.f32.mrb[64].mxu1 }
 0x16a   : > { %v4027_v33 = vpop.f32.mrb[53].mxu0  ;;  %v1258_v34 = vadd.f32 %v1257_v53, %v6035_v23  ;;  %v1259_v38 = vpop.f32.mrb[65].mxu1 }
 0x16b   : > { %v4028_v52 = vadd.f32 %v4027_v33, %v4026_v50 }
 0x16d   : > { %v4029_v27 = vpop.f32.mrb[54].mxu0  ;;  %v6072_v41 = vadd.f32 %v4028_v52, %v900_v40  ;;  %v1264_v36 = vpop.f32.mrb[66].mxu1 }
 0x16e   : > { %v4030_v28 = vpop.f32.mrb[55].mxu0  ;;  %v1265_v9 = vadd.f32 %v1264_v36, %v6042_v44  ;;  %v1266_v8 = vpop.f32.mrb[67].mxu1 }
 0x16f   : > { %v4031_v4 = vadd.f32 %v4030_v28, %v4029_v27 }
 0x171   : > { %v4032_v0 = vpop.f32.mrb[56].mxu0  ;;  %v6075_v14 = vadd.f32 %v4031_v4, %v909_v47  ;;  %v1271_v22 = vpop.f32.mrb[68].mxu1 }
 0x172   : > { %v4033_v3 = vpop.f32.mrb[57].mxu0  ;;  %v1272_v39 = vadd.f32 %v1271_v22, %v6048_v17  ;;  %v1273_v37 = vpop.f32.mrb[69].mxu1 }
 0x173   : > { %v4034_v29 = vadd.f32 %v4033_v3, %v4032_v0 }
 0x175   : > { %v4035_v23 = vpop.f32.mrb[58].mxu0  ;;  %v6078_v51 = vadd.f32 %v4034_v29, %v918_v62  ;;  %v1278_v24 = vpop.f32.mrb[70].mxu1 }
 0x176   : > { %v4036_v40 = vpop.f32.mrb[59].mxu0  ;;  %v1279_v45 = vadd.f32 %v1278_v24, %v6051_v10  ;;  %v1280_v42 = vpop.f32.mrb[71].mxu1 }
 0x177   : > { %v4037_v26 = vadd.f32 %v4036_v40, %v4035_v23 }
 0x179   : > { %v4038_v44 = vpop.f32.mrb[60].mxu0  ;;  %v6081_v2 = vadd.f32 %v4037_v26, %v927_v16  ;;  %v1285_v63 = vpop.f32.mrb[72].mxu1 }
 0x17a   : > { %v4039_v47 = vpop.f32.mrb[61].mxu0  ;;  %v6084_v32 = vadd.f32 %v1285_v63, %v6054_v55  ;;  %v1287_v17 = vpop.f32.mrb[73].mxu1 }
 0x17b   : > { %v4040_v31 = vadd.f32 %v4039_v47, %v4038_v44 }
 0x17d   : > { %v4041_v57 = vpop.f32.mrb[62].mxu0  ;;  %v6086_v13 = vadd.f32 %v4040_v31, %v936_v60  ;;  %v1292_v1 = vpop.f32.mrb[74].mxu1 }
 0x17e   : > { %v4042_v62 = vpop.f32.mrb[63].mxu0  ;;  %v6089_v58 = vadd.f32 %v1292_v1, %v6057_v54  ;;  %v1294_v10 = vpop.f32.mrb[75].mxu1 }
 0x17f   : > { %v4043_v35 = vadd.f32 %v4042_v62, %v4041_v57 }
 0x181   : > { %v4076_v56 = vpop.f32.mrb[64].mxu0  ;;  %v6091_v16 = vadd.f32 %v4043_v35, %v945_v59  ;;  %v1299_v5 = vpop.f32.mrb[76].mxu1 }
 0x182   : > { %v4077_v48 = vpop.f32.mrb[65].mxu0  ;;  %v6094_v11 = vadd.f32 %v1299_v5, %v6060_v49  ;;  %v1301_v18 = vpop.f32.mrb[77].mxu1 }
 0x183   : > { %v4078_v55 = vadd.f32 %v4077_v48, %v4076_v56 }
 0x185   : > { %v1435_v43 = vadd.f32 %v4078_v55, %v1258_v34  ;;  %v4079_v60 = vpop.f32.mrb[66].mxu0  ;;  %v1306_v46 = vpop.f32.mrb[78].mxu1 }
 0x186   : > { %v4080_v6 = vpop.f32.mrb[67].mxu0  ;;  %v6097_v61 = vadd.f32 %v1306_v46, %v6063_v7  ;;  %v1308_v21 = vpop.f32.mrb[79].mxu1 }
 0x187   : > { %v1543_v19 = vmul.f32 0.00390625, %v1435_v43  ;;  %v4081_v54 = vadd.f32 %v4080_v6, %v4079_v60 }
 0x189   : > { %v1568_v50 = vand.u32 4294901760, %v1543_v19  ;;  %v1442_v59 = vadd.f32 %v4081_v54, %v1265_v9  ;;  %v4082_v33 = vpop.f32.mrb[68].mxu0  ;;  %v1313_v53 = vpop.f32.mrb[80].mxu1 }
 0x18a   : > { %v4083_v52 = vpop.f32.mrb[69].mxu0  ;;  %v6100_v27 = vadd.f32 %v1313_v53, %v6066_v25  ;;  %v1315_v28 = vpop.f32.mrb[81].mxu1 }
 0x18b   : > { %v1690_v38 = vsub.f32 %v1543_v19, %v1568_v50  ;;  %v1544_v49 = vmul.f32 0.00390625, %v1442_v59  ;;  %v4084_v34 = vadd.f32 %v4083_v52, %v4082_v33 }
 0x18d   : > { %v1571_v36 = vand.u32 4294901760, %v1544_v49  ;;  %v1449_v4 = vadd.f32 %v4084_v34, %v1272_v39  ;;  %v4085_v8 = vpop.f32.mrb[70].mxu0  ;;  %v1691_v0 = vand.u32 4294901760, %v1690_v38  ;;  %v1320_v7 = vpop.f32.mrb[82].mxu1 }
 0x18e   : > { %v4086_v3 = vpop.f32.mrb[71].mxu0  ;;  %v6105_v37 = vadd.f32 %v1320_v7, %v6069_v20  ;;  %v1322_v23 = vpop.f32.mrb[83].mxu1 }
 0x18f   : > { %v6102_v22 = vpack.c.bf16 %v1571_v36, %v1568_v50  ;;  %v1697_v29 = vsub.f32 %v1544_v49, %v1571_v36  ;;  %v1545_v9 = vmul.f32 0.00390625, %v1449_v4  ;;  %v4087_v40 = vadd.f32 %v4086_v3, %v4085_v8 }
 0x190   : > { %v1692_v26 = vsub.f32 %v1690_v38, %v1691_v0 }
 0x191   : > { %v1574_v24 = vand.u32 4294901760, %v1545_v9  ;;  %v4088_v25 = vpop.f32.mrb[72].mxu0  ;;  %4833 = vmatprep.subr.bf16.mxu1 %v6102_v22  ;;  %v1698_v42 = vand.u32 4294901760, %v1697_v29  ;;  %v6108_v39 = vpack.c.bf16 %v1697_v29, %v1690_v38  ;;  %v1456_v44 = vadd.f32 %v4087_v40, %v1279_v45  ;;  %v1327_v47 = vpop.f32.mrb[84].mxu1 }
 0x192   : > { %v4089_v63 = vpop.f32.mrb[73].mxu0  ;;  %4835 = vmatpush3.bf16.msra.mxu1 %v6102_v22  ;;  %v6112_v17 = vadd.f32 %v1327_v47, %v6072_v41  ;;  %v1329_v57 = vpop.f32.mrb[85].mxu1  ;;  %v1693_v5 = vand.u32 4294901760, %v1692_v26 }
 0x193   : > { %v1704_v31 = vsub.f32 %v1545_v9, %v1574_v24  ;;  %v4090_v20 = vadd.f32 %v4089_v63, %v4088_v25  ;;  %v1699_v62 = vsub.f32 %v1697_v29, %v1698_v42  ;;  %v1546_v1 = vmul.f32 0.00390625, %v1456_v44 }
 0x194   : > { %v6114_v35 = vpack.c.bf16 %v1698_v42, %v1691_v0 }
 0x195   : > { %v1463_v10 = vadd.f32 %v4090_v20, %v6084_v32  ;;  %v4091_v56 = vpop.f32.mrb[74].mxu0  ;;  %v1700_v48 = vand.u32 4294901760, %v1699_v62  ;;  %v1577_v45 = vand.u32 4294901760, %v1546_v1  ;;  %v1334_v55 = vpop.f32.mrb[86].mxu1  ;;  %v1705_v43 = vand.u32 4294901760, %v1704_v31 }
 0x196   : > { %v4092_v18 = vpop.f32.mrb[75].mxu0  ;;  %v6118_v46 = vadd.f32 %v1334_v55, %v6075_v14  ;;  %v1336_v6 = vpop.f32.mrb[87].mxu1 }
 0x197   : > { %v1547_v60 = vmul.f32 0.00390625, %v1463_v10  ;;  %v4093_v41 = vadd.f32 %v4092_v18, %v4091_v56  ;;  %v6120_v19 = vpack.c.bf16 %v1700_v48, %v1693_v5  ;;  %v6122_v54 = vpack.c.bf16 %v1577_v45, %v1574_v24 }
 0x198   : > { %v1711_v21 = vsub.f32 %v1546_v1, %v1577_v45  ;;  %v1706_v52 = vsub.f32 %v1704_v31, %v1705_v43 }
 0x199   : > { %v1580_v50 = vand.u32 4294901760, %v1547_v60  ;;  %v1470_v32 = vadd.f32 %v4093_v41, %v6089_v58  ;;  %v4094_v59 = vpop.f32.mrb[76].mxu0  ;;  %4837 = vmatprep.subr.bf16.mxu1 %v6122_v54  ;;  %v1341_v33 = vpop.f32.mrb[88].mxu1 }
 0x19a   : > { %v4095_v53 = vpop.f32.mrb[77].mxu0  ;;  %v1712_v38 = vand.u32 4294901760, %v1711_v21  ;;  %v6126_v49 = vpack.c.bf16 %v1711_v21, %v1704_v31  ;;  %v6129_v28 = vadd.f32 %v1341_v33, %v6078_v51  ;;  %4839 = vmatpush3.bf16.msra.mxu1 %v6122_v54  ;;  %v1343_v4 = vpop.f32.mrb[89].mxu1  ;;  %v1707_v40 = vand.u32 4294901760, %v1706_v52 }
 0x19b   : > { %v1718_v14 = vsub.f32 %v1547_v60, %v1580_v50  ;;  %v1548_v34 = vmul.f32 0.00390625, %v1470_v32  ;;  %v4096_v36 = vadd.f32 %v4095_v53, %v4094_v59 }
 0x19c   : > { %v1713_v8 = vsub.f32 %v1711_v21, %v1712_v38  ;;  %v6132_v58 = vpack.c.bf16 %v1712_v38, %v1705_v43 }
 0x19d   : > { %v1583_v0 = vand.u32 4294901760, %v1548_v34  ;;  %v1477_v7 = vadd.f32 %v4096_v36, %v6094_v11  ;;  %v4097_v3 = vpop.f32.mrb[78].mxu0  ;;  %v1719_v29 = vand.u32 4294901760, %v1718_v14  ;;  %v1348_v9 = vpop.f32.mrb[90].mxu1 }
 0x19e   : > { %v4098_v23 = vpop.f32.mrb[79].mxu0  ;;  %v1714_v24 = vand.u32 4294901760, %v1713_v8  ;;  %v6138_v42 = vadd.f32 %v1348_v9, %v6081_v2  ;;  %v1350_v44 = vpop.f32.mrb[91].mxu1 }
 0x19f   : > { %v6135_v25 = vpack.c.bf16 %v1583_v0, %v1580_v50  ;;  %v1725_v51 = vsub.f32 %v1548_v34, %v1583_v0  ;;  %v1549_v26 = vmul.f32 0.00390625, %v1477_v7  ;;  %v4099_v47 = vadd.f32 %v4098_v23, %v4097_v3 }
 0x1a0   : > { %v6140_v63 = vpack.c.bf16 %v1714_v24, %v1707_v40  ;;  %v1720_v11 = vsub.f32 %v1718_v14, %v1719_v29 }
 0x1a1   : > { %v1586_v31 = vand.u32 4294901760, %v1549_v26  ;;  %v4100_v20 = vpop.f32.mrb[80].mxu0  ;;  %4841 = vmatprep.subr.bf16.mxu1 %v6135_v25  ;;  %v1726_v57 = vand.u32 4294901760, %v1725_v51  ;;  %v6143_v62 = vpack.c.bf16 %v1725_v51, %v1718_v14  ;;  %v1484_v1 = vadd.f32 %v4099_v47, %v6097_v61  ;;  %v1355_v10 = vpop.f32.mrb[92].mxu1 }
 0x1a2   : > { %v4101_v56 = vpop.f32.mrb[81].mxu0  ;;  %4843 = vmatpush3.bf16.msra.mxu1 %v6135_v25  ;;  %v6148_v5 = vadd.f32 %v1355_v10, %v6086_v13  ;;  %v1357_v45 = vpop.f32.mrb[93].mxu1  ;;  %v1721_v6 = vand.u32 4294901760, %v1720_v11 }
 0x1a3   : > { %v1732_v2 = vsub.f32 %v1549_v26, %v1586_v31  ;;  %v4102_v48 = vadd.f32 %v4101_v56, %v4100_v20  ;;  %v1727_v55 = vsub.f32 %v1725_v51, %v1726_v57  ;;  %v1550_v18 = vmul.f32 0.00390625, %v1484_v1 }
 0x1a4   : > { %v6150_v43 = vpack.c.bf16 %v1726_v57, %v1719_v29 }
 0x1a5   : > { %v1491_v60 = vadd.f32 %v4102_v48, %v6100_v27  ;;  %v4103_v41 = vpop.f32.mrb[82].mxu0  ;;  %v1728_v21 = vand.u32 4294901760, %v1727_v55  ;;  %v1589_v61 = vand.u32 4294901760, %v1550_v18  ;;  %v1362_v50 = vpop.f32.mrb[94].mxu1  ;;  %v1733_v59 = vand.u32 4294901760, %v1732_v2 }
 0x1a6   : > { %v4104_v32 = vpop.f32.mrb[83].mxu0  ;;  %v6154_v53 = vadd.f32 %v1362_v50, %v6091_v16  ;;  %v1364_v52 = vpop.f32.mrb[95].mxu1 }
 0x1a7   : > { %v1551_v33 = vmul.f32 0.00390625, %v1491_v60  ;;  %v4105_v13 = vadd.f32 %v4104_v32, %v4103_v41  ;;  %v6156_v38 = vpack.c.bf16 %v1728_v21, %v1721_v6  ;;  %v6158_v14 = vpack.c.bf16 %v1589_v61, %v1586_v31 }
 0x1a8   : > { %v1739_v34 = vsub.f32 %v1550_v18, %v1589_v61  ;;  %v1734_v0 = vsub.f32 %v1732_v2, %v1733_v59 }
 0x1a9   : > { %v1592_v36 = vand.u32 4294901760, %v1551_v33  ;;  %v1498_v27 = vadd.f32 %v4105_v13, %v6105_v37  ;;  %v4106_v4 = vpop.f32.mrb[84].mxu0  ;;  %4845 = vmatprep.subr.bf16.mxu1 %v6158_v14 }
 0x1aa   : > { %v4107_v8 = vpop.f32.mrb[85].mxu0  ;;  %v1740_v7 = vand.u32 4294901760, %v1739_v34  ;;  %v6162_v3 = vpack.c.bf16 %v1739_v34, %v1732_v2  ;;  %4847 = vmatpush3.bf16.msra.mxu1 %v6158_v14  ;;  %v1735_v44 = vand.u32 4294901760, %v1734_v0  ;;  %v1561_v0 = vld [vmem:[%s6855_s1 + $0x10] sm:$0xff] }
 0x1ab   : > { %v1746_v16 = vsub.f32 %v1551_v33, %v1592_v36  ;;  %v1552_v29 = vmul.f32 0.00390625, %v1498_v27  ;;  %v4108_v9 = vadd.f32 %v4107_v8, %v4106_v4 }
 0x1ac   : > { %v1741_v23 = vsub.f32 %v1739_v34, %v1740_v7  ;;  %v6165_v40 = vpack.c.bf16 %v1740_v7, %v1733_v59  ;;  %v1560_v59 = vld [vmem:[%s6855_s1 + $0x8] sm:$0xff] }
 0x1ad   : > { %v1595_v24 = vand.u32 4294901760, %v1552_v29  ;;  %v1505_v51 = vadd.f32 %v4108_v9, %v6112_v17  ;;  %v4109_v37 = vpop.f32.mrb[86].mxu0  ;;  %v1747_v31 = vand.u32 4294901760, %v1746_v16  ;;  %v6188_v7 = vand.u32 4294901760, %v1560_v59 }
 0x1ae   : > { %v4110_v26 = vpop.f32.mrb[87].mxu0  ;;  %v1742_v47 = vand.u32 4294901760, %v1741_v23 }
 0x1af   : > { %v6168_v20 = vpack.c.bf16 %v1595_v24, %v1592_v36  ;;  %v1753_v11 = vsub.f32 %v1552_v29, %v1595_v24  ;;  %v1553_v57 = vmul.f32 0.00390625, %v1505_v51  ;;  %v4111_v1 = vadd.f32 %v4110_v26, %v4109_v37  ;;  %v1562_v24 = vld [vmem:[%s6855_s1 + $0x18] sm:$0xff] }
 0x1b0   : > { %v6170_v10 = vpack.c.bf16 %v1742_v47, %v1735_v44  ;;  %v1748_v18 = vsub.f32 %v1746_v16, %v1747_v31  ;;  %v6200_v44 = vand.u32 4294901760, %v1561_v0 }
 0x1b1   : > { %v1598_v56 = vand.u32 4294901760, %v1553_v57  ;;  %v1512_v2 = vadd.f32 %v4111_v1, %v6118_v46  ;;  %v4112_v48 = vpop.f32.mrb[88].mxu0  ;;  %4849 = vmatprep.subr.bf16.mxu1 %v6168_v20  ;;  %v1754_v45 = vand.u32 4294901760, %v1753_v11  ;;  %v6174_v17 = vpack.c.bf16 %v1753_v11, %v1746_v16 }
 0x1b2   : > { %v4113_v55 = vpop.f32.mrb[89].mxu0  ;;  %4851 = vmatpush3.bf16.msra.mxu1 %v6168_v20  ;;  %v1749_v52 = vand.u32 4294901760, %v1748_v18  ;;  %v6205_v1 = vand.u32 4294901760, %v1562_v24 }
 0x1b3   : > { %v1760_v60 = vsub.f32 %v1553_v57, %v1598_v56  ;;  %v1554_v41 = vmul.f32 0.00390625, %v1512_v2  ;;  %v4114_v6 = vadd.f32 %v4113_v55, %v4112_v48  ;;  %v1755_v21 = vsub.f32 %v1753_v11, %v1754_v45 }
 0x1b4   : > { %v6177_v61 = vpack.c.bf16 %v1754_v45, %v1747_v31  ;;  %v6203_v57 = vsub.f32 %v1560_v59, %v6188_v7 }
 0x1b5   : > { %v1601_v50 = vand.u32 4294901760, %v1554_v41  ;;  %v1519_v32 = vadd.f32 %v4114_v6, %v6129_v28  ;;  %v4115_v46 = vpop.f32.mrb[90].mxu0  ;;  %v1756_v33 = vand.u32 4294901760, %v1755_v21  ;;  %v1761_v34 = vand.u32 4294901760, %v1760_v60 }
 0x1b6   : > { %v4116_v13 = vpop.f32.mrb[91].mxu0  ;;  %v6211_v6 = vsub.f32 %v1561_v0, %v6200_v44  ;;  %v1660_v59 = vand.u32 4294901760, %v6203_v57 }
 0x1b7   : > { %v6183_v36 = vpack.c.bf16 %v1601_v50, %v1598_v56  ;;  %v1767_v27 = vsub.f32 %v1554_v41, %v1601_v50  ;;  %v1555_v4 = vmul.f32 0.00390625, %v1519_v32  ;;  %v4117_v8 = vadd.f32 %v4116_v13, %v4115_v46 }
 0x1b8   : > { %v6190_v28 = vpack.c.bf16 %v1756_v33, %v1749_v52  ;;  %v1762_v26 = vsub.f32 %v1760_v60, %v1761_v34  ;;  %v6217_v52 = vsub.f32 %v1562_v24, %v6205_v1 }
 0x1b9   : > { %v1604_v16 = vand.u32 4294901760, %v1555_v4  ;;  %v1526_v29 = vadd.f32 %v4117_v8, %v6138_v42  ;;  %v4118_v9 = vpop.f32.mrb[92].mxu0  ;;  %4853 = vmatprep.subr.bf16.mxu1 %v6183_v36  ;;  %v1768_v23 = vand.u32 4294901760, %v1767_v27  ;;  %v6197_v51 = vpack.c.bf16 %v1767_v27, %v1760_v60 }
 0x1ba   : > { %v4119_v37 = vpop.f32.mrb[93].mxu0  ;;  %4855 = vmatpush3.bf16.msra.mxu1 %v6183_v36  ;;  %v1763_v41 = vand.u32 4294901760, %v1762_v26  ;;  %v1670_v8 = vand.u32 4294901760, %v6211_v6 }
 0x1bb   : > { %v1774_v47 = vsub.f32 %v1555_v4, %v1604_v16  ;;  %v1556_v31 = vmul.f32 0.00390625, %v1526_v29  ;;  %v4120_v11 = vadd.f32 %v4119_v37, %v4118_v9  ;;  %v1769_v42 = vsub.f32 %v1767_v27, %v1768_v23 }
 0x1bc   : > { %v6207_v56 = vpack.c.bf16 %v1768_v23, %v1761_v34  ;;  %v1661_v23 = vsub.f32 %v6203_v57, %v1660_v59 }
 0x1bd   : > { %v1607_v2 = vand.u32 4294901760, %v1556_v31  ;;  %v1533_v48 = vadd.f32 %v4120_v11, %v6148_v5  ;;  %v4121_v45 = vpop.f32.mrb[94].mxu0  ;;  %v1770_v55 = vand.u32 4294901760, %v1769_v42  ;;  %v1775_v18 = vand.u32 4294901760, %v1774_v47 }
 0x1be   : > { %v4122_v60 = vpop.f32.mrb[95].mxu0 }
 0x1bf   : > { %v6213_v21 = vpack.c.bf16 %v1607_v2, %v1604_v16  ;;  %v1781_v50 = vsub.f32 %v1556_v31, %v1607_v2  ;;  %v1557_v32 = vmul.f32 0.00390625, %v1533_v48  ;;  %v4123_v46 = vadd.f32 %v4122_v60, %v4121_v45 }
 0x1c0   : > { %v4884_v33 = vpack.c.bf16 %v1770_v55, %v1763_v41  ;;  %v1776_v13 = vsub.f32 %v1774_v47, %v1775_v18  ;;  %v1671_v31 = vsub.f32 %v6211_v6, %v1670_v8  ;;  %v1662_v48 = vand.u32 4294901760, %v1661_v23 }
 0x1c1   : > { %v1610_v5 = vand.u32 4294901760, %v1557_v32  ;;  %v1540_v34 = vadd.f32 %v4123_v46, %v6154_v53  ;;  %4857 = vmatprep.subr.bf16.mxu1 %v6213_v21  ;;  %v1782_v27 = vand.u32 4294901760, %v1781_v50  ;;  %v6221_v4 = vpack.c.bf16 %v1781_v50, %v1774_v47 }
 0x1c2   : > { %4859 = vmatpush3.bf16.msra.mxu1 %v6213_v21  ;;  %v1680_v53 = vand.u32 4294901760, %v6217_v52  ;;  %v1777_v37 = vand.u32 4294901760, %v1776_v13  ;;  %v1672_v41 = vand.u32 4294901760, %v1671_v31 }
 0x1c3   : > { %v1788_v0 = vsub.f32 %v1557_v32, %v1610_v5  ;;  %v1558_v16 = vmul.f32 0.00390625, %v1540_v34  ;;  %v1783_v29 = vsub.f32 %v1781_v50, %v1782_v27  ;;  %v6225_v9 = vpack.c.bf16 %v1782_v27, %v1775_v18 }
 0x1c4   : > { %v1681_v18 = vsub.f32 %v6217_v52, %v1680_v53 }
 0x1c5   : > { %v1613_v24 = vand.u32 4294901760, %v1558_v16  ;;  %v1784_v26 = vand.u32 4294901760, %v1783_v29  ;;  %v1789_v47 = vand.u32 4294901760, %v1788_v0  ;;  %v2369_v29 = vld [vmem:[%s6857_s3 + $0x20] sm:$0xff] }
 0x1c7   : > { %v6234_v11 = vpack.c.bf16 %v1613_v24, %v1610_v5  ;;  %v1795_v42 = vsub.f32 %v1558_v16, %v1613_v24  ;;  %v4888_v2 = vpack.c.bf16 %v1784_v26, %v1777_v37  ;;  %v1790_v45 = vsub.f32 %v1788_v0, %v1789_v47  ;;  %v2370_v26 = vld [vmem:[%s6857_s3 + $0x28] sm:$0xff] }
 0x1c8   : > { %v1682_v5 = vand.u32 4294901760, %v1681_v18  ;;  %v2371_v18 = vld [vmem:[%s6857_s3 + $0x30] sm:$0xff] }
 0x1c9   : > { %4861 = vmatprep.subr.bf16.mxu1 %v6234_v11  ;;  %v1796_v55 = vand.u32 4294901760, %v1795_v42  ;;  %v4924_v60 = vpack.c.bf16 %v1795_v42, %v1788_v0  ;;  %v1791_v46 = vand.u32 4294901760, %v1790_v45 }
 0x1ca   : > { %4863 = vmatpush3.bf16.msra.mxu1 %v6234_v11 }
 0x1cb   : > { %4865 = vmatprep.subr.bf16.mxu1 %v6120_v19  ;;  %v1797_v50 = vsub.f32 %v1795_v42, %v1796_v55  ;;  %v6242_v32 = vpack.c.bf16 %v1796_v55, %v1789_v47 }
 0x1cd   : > { %4397 = vmatmul.mubr.f32.vlgmr.msra.gmra.mrb[96].mxu1 %v1662_v48  ;;  %v1798_v13 = vand.u32 4294901760, %v1797_v50  ;;  %v2372_v50 = vld [vmem:[%s6857_s3 + $0x38] sm:$0xff] }
 0x1ce   : > { %4867 = vmatpush3.bf16.msra.mxu1 %v6120_v19  ;;  %4399 = vmatprep.mubr.f32.mxu1 %v1672_v41 }
 0x1cf   : > { %4869 = vmatprep.subr.bf16.mxu1 %v6140_v63  ;;  %v4892_v34 = vpack.c.bf16 %v1798_v13, %v1791_v46 }
 0x1d1   : > { %4400 = vmatmul.mubr.f32.gmra.mrb[98].mxu1 %v1682_v5  ;;  %v2417_v5 = vsel %vm2397_vm0, %v2371_v18, 0 }
 0x1d2   : > { %4871 = vmatpush3.bf16.msra.mxu1 %v6140_v63  ;;  %4434 = vmatprep.mubr.f32.mxu1 %v6033_v12  ;;  %v1563_v63 = vld [vmem:[%s6856_s2] sm:$0xff] }
 0x1d3   : > { %4873 = vmatprep.subr.bf16.mxu1 %v6156_v38 }
 0x1d6   : > { %4875 = vmatpush3.bf16.msra.mxu1 %v6156_v38 }
 0x1d7   : > { %4877 = vmatprep.subr.bf16.mxu1 %v6170_v10 }
 0x1da   : > { %4879 = vmatpush3.bf16.msra.mxu1 %v6170_v10 }
 0x1db   : > { %4881 = vmatprep.subr.bf16.mxu1 %v6190_v28 }
 0x1de   : > { %4883 = vmatpush3.bf16.msra.mxu1 %v6190_v28 }
 0x1df   : > { %4885 = vmatprep.subr.bf16.mxu1 %v4884_v33 }
 0x1e2   : > { %4887 = vmatpush3.bf16.msra.mxu1 %v4884_v33 }
 0x1e3   : > { %4889 = vmatprep.subr.bf16.mxu1 %v4888_v2 }
 0x1e6   : > { %4891 = vmatpush3.bf16.msra.mxu1 %v4888_v2  ;;  %v2414_v2 = vsel %vm2397_vm0, %v2370_v26, 0 }
 0x1e7   : > { %4893 = vmatprep.subr.bf16.mxu1 %v4892_v34 }
 0x1ea   : > { %4895 = vmatpush3.bf16.msra.mxu1 %v4892_v34 }
 0x1eb   : > { %4897 = vmatprep.subr.bf16.mxu1 %v6108_v39 }
 0x1ed   : > { %4435 = vmatmul.mubr.f32.vlgmr.msra.gmra.mrb[96].mxu1 %v6188_v7 }
 0x1ee   : > { %4899 = vmatpush3.bf16.msra.mxu1 %v6108_v39  ;;  %4437 = vmatprep.mubr.f32.mxu1 %v6200_v44  ;;  %v2367_v39 = vld [vmem:[%s6857_s3 + $0x10] sm:$0xff] }
 0x1ef   : > { %4901 = vmatprep.subr.bf16.mxu1 %v6126_v49 }
 0x1f1   : > { %4438 = vmatmul.mubr.f32.gmra.mrb[98].mxu1 %v6205_v1 }
 0x1f2   : > { %4903 = vmatpush3.bf16.msra.mxu1 %v6126_v49  ;;  %4472 = vmatprep.mubr.f32.mxu1 %v6038_v30 }
 0x1f3   : > { %4905 = vmatprep.subr.bf16.mxu1 %v6143_v62 }
 0x1f6   : > { %4907 = vmatpush3.bf16.msra.mxu1 %v6143_v62 }
 0x1f7   : > { %4909 = vmatprep.subr.bf16.mxu1 %v6162_v3 }
 0x1fa   : > { %4911 = vmatpush3.bf16.msra.mxu1 %v6162_v3  ;;  %v1566_v3 = vld [vmem:[%s6856_s2 + $0x18] sm:$0xff] }
 0x1fb   : > { %4913 = vmatprep.subr.bf16.mxu1 %v6174_v17 }
 0x1fe   : > { %4915 = vmatpush3.bf16.msra.mxu1 %v6174_v17 }
 0x1ff   : > { %4917 = vmatprep.subr.bf16.mxu1 %v6197_v51 }
 0x202   : > { %4919 = vmatpush3.bf16.msra.mxu1 %v6197_v51 }
 0x203   : > { %4921 = vmatprep.subr.bf16.mxu1 %v6221_v4 }
 0x206   : > { %4923 = vmatpush3.bf16.msra.mxu1 %v6221_v4 }
 0x207   : > { %4925 = vmatprep.subr.bf16.mxu1 %v4924_v60 }
 0x20a   : > { %4927 = vmatpush3.bf16.msra.mxu1 %v4924_v60  ;;  %v6414_v60 = vand.u32 4294901760, %v2414_v2 }
 0x20b   : > { %4929 = vmatprep.subr.bf16.mxu1 %v6102_v22 }
 0x20d   : > { %4473 = vmatmul.mubr.f32.vlgmr.msra.gmra.mrb[96].mxu1 %v6203_v57 }
 0x20e   : > { %4931 = vmatpush3.bf16.msra.mxu1 %v6102_v22  ;;  %4475 = vmatprep.mubr.f32.mxu1 %v6211_v6  ;;  %v2366_v6 = vld [vmem:[%s6857_s3 + $0x8] sm:$0xff] }
 0x20f   : > { %4933 = vmatprep.subr.bf16.mxu1 %v6122_v54 }
 0x211   : > { %4476 = vmatmul.mubr.f32.gmra.mrb[98].mxu1 %v6217_v52 }
 0x212   : > { %4935 = vmatpush3.bf16.msra.mxu1 %v6122_v54  ;;  %4510 = vmatprep.mubr.f32.mxu1 %v1650_v15 }
 0x213   : > { %4937 = vmatprep.subr.bf16.mxu1 %v6135_v25 }
 0x216   : > { %4939 = vmatpush3.bf16.msra.mxu1 %v6135_v25 }
 0x217   : > { %4941 = vmatprep.subr.bf16.mxu1 %v6158_v14 }
 0x21a   : > { %4943 = vmatpush3.bf16.msra.mxu1 %v6158_v14 }
 0x21b   : > { %4945 = vmatprep.subr.bf16.mxu1 %v6168_v20 }
 0x21e   : > { %4947 = vmatpush3.bf16.msra.mxu1 %v6168_v20 }
 0x21f   : > { %4949 = vmatprep.subr.bf16.mxu1 %v6183_v36 }
 0x222   : > { %4951 = vmatpush3.bf16.msra.mxu1 %v6183_v36 }
 0x223   : > { %4953 = vmatprep.subr.bf16.mxu1 %v6213_v21 }
 0x226   : > { %4955 = vmatpush3.bf16.msra.mxu1 %v6213_v21 }
 0x227   : > { %4957 = vmatprep.subr.bf16.mxu1 %v6234_v11 }
 0x22a   : > { %4959 = vmatpush3.bf16.msra.mxu1 %v6234_v11 }
 0x22b   : > { %4961 = vmatprep.subr.bf16.mxu1 %v6114_v35 }
 0x22d   : > { %4511 = vmatmul.mubr.f32.vlgmr.msra.gmra.mrb[96].mxu1 %v1660_v59  ;;  %v2402_v59 = vsel %vm2397_vm0, %v2366_v6, 0  ;;  %v2375_v6 = vld [vmem:[%s6857_s3 + $0x50] sm:$0xff] }
 0x22e   : > { %4963 = vmatpush3.bf16.msra.mxu1 %v6114_v35  ;;  %4513 = vmatprep.mubr.f32.mxu1 %v1670_v8  ;;  %v2405_v35 = vsel %vm2397_vm0, %v2367_v39, 0  ;;  %v6385_v27 = vand.u32 4294901760, %v2402_v59  ;;  %v2373_v39 = vld [vmem:[%s6857_s3 + $0x40] sm:$0xff] }
 0x22f   : > { %4965 = vmatprep.subr.bf16.mxu1 %v6132_v58 }
 0x230   : > { %v6393_v23 = vsub.f32 %v2402_v59, %v6385_v27 }
 0x231   : > { %4514 = vmatmul.mubr.f32.gmra.mrb[98].mxu1 %v1680_v53 }
 0x232   : > { %4967 = vmatpush3.bf16.msra.mxu1 %v6132_v58  ;;  %4548 = vmatprep.mubr.f32.mxu1 %v6033_v12  ;;  %v2527_v42 = vand.u32 4294901760, %v6393_v23 }
 0x233   : > { %4969 = vmatprep.subr.bf16.mxu1 %v6150_v43 }
 0x234   : > { %v6419_v41 = vsub.f32 %v6393_v23, %v2527_v42 }
 0x236   : > { %4971 = vmatpush3.bf16.msra.mxu1 %v6150_v43 }
 0x237   : > { %4973 = vmatprep.subr.bf16.mxu1 %v6165_v40 }
 0x23a   : > { %4975 = vmatpush3.bf16.msra.mxu1 %v6165_v40 }
 0x23b   : > { %4977 = vmatprep.subr.bf16.mxu1 %v6177_v61 }
 0x23e   : > { %4979 = vmatpush3.bf16.msra.mxu1 %v6177_v61 }
 0x23f   : > { %4981 = vmatprep.subr.bf16.mxu1 %v6207_v56 }
 0x242   : > { %4983 = vmatpush3.bf16.msra.mxu1 %v6207_v56 }
 0x243   : > { %4985 = vmatprep.subr.bf16.mxu1 %v6225_v9 }
 0x246   : > { %4987 = vmatpush3.bf16.msra.mxu1 %v6225_v9 }
 0x247   : > { %4989 = vmatprep.subr.bf16.mxu1 %v6242_v32 }
 0x24a   : > { %4991 = vmatpush3.bf16.msra.mxu1 %v6242_v32 }
 0x24b   : > { %4993 = vmatprep.subr.bf16.mxu1 %v6102_v22 }
 0x24d   : > { %4549 = vmatmul.mubr.f32.vlgmr.msra.gmra.mrb[96].mxu1 %v6188_v7 }
 0x24e   : > { %4995 = vmatpush3.bf16.msra.mxu1 %v6102_v22  ;;  %4551 = vmatprep.mubr.f32.mxu1 %v6200_v44 }
 0x24f   : > { %4997 = vmatprep.subr.bf16.mxu1 %v6122_v54 }
 0x251   : > { %4552 = vmatmul.mubr.f32.gmra.mrb[98].mxu1 %v6205_v1 }
 0x252   : > { %4999 = vmatpush3.bf16.msra.mxu1 %v6122_v54  ;;  %4586 = vmatprep.mubr.f32.mxu1 %v6033_v12  ;;  %v2365_v12 = vld [vmem:[%s6857_s3] sm:$0xff]  ;;  %v6353_v54 = vand.u32 4294901760, %v2405_v35 }
 0x253   : > { %5001 = vmatprep.subr.bf16.mxu1 %v6135_v25  ;;  %v2399_v30 = vsel %vm2397_vm0, %v2365_v12, 0 }
 0x254   : > { %v6343_v15 = vand.u32 4294901760, %v2399_v30  ;;  %v6396_v37 = vsub.f32 %v2405_v35, %v6353_v54 }
 0x256   : > { %5003 = vmatpush3.bf16.msra.mxu1 %v6135_v25  ;;  %v6346_v22 = vsub.f32 %v2399_v30, %v6343_v15  ;;  %v1564_v25 = vld [vmem:[%s6856_s2 + $0x8] sm:$0xff]  ;;  %v2537_v48 = vand.u32 4294901760, %v6396_v37 }
 0x257   : > { %5005 = vmatprep.subr.bf16.mxu1 %v6158_v14 }
 0x258   : > { %v2517_v19 = vand.u32 4294901760, %v6346_v22  ;;  %v6427_v46 = vsub.f32 %v6396_v37, %v2537_v48 }
 0x25a   : > { %5007 = vmatpush3.bf16.msra.mxu1 %v6158_v14  ;;  %v2518_v49 = vsub.f32 %v6346_v22, %v2517_v19 }
 0x25b   : > { %5009 = vmatprep.subr.bf16.mxu1 %v6168_v20 }
 0x25c   : > { %v2519_v58 = vand.u32 4294901760, %v2518_v49  ;;  %v6442_v49 = vsub.f32 %v2414_v2, %v6414_v60 }
 0x25e   : > { %5011 = vmatpush3.bf16.msra.mxu1 %v6168_v20  ;;  %4600 = vmatprep.mubr.f32.mxu0 %v2519_v58  ;;  %v1565_v20 = vld [vmem:[%s6856_s2 + $0x10] sm:$0xff]  ;;  %v2420_v58 = vsel %vm2397_vm0, %v2372_v50, 0 }
 0x25f   : > { %5013 = vmatprep.subr.bf16.mxu1 %v6183_v36 }
 0x262   : > { %5015 = vmatpush3.bf16.msra.mxu1 %v6183_v36 }
 0x263   : > { %5017 = vmatprep.subr.bf16.mxu1 %v6213_v21 }
 0x266   : > { %5019 = vmatpush3.bf16.msra.mxu1 %v6213_v21  ;;  %v2368_v21 = vld [vmem:[%s6857_s3 + $0x18] sm:$0xff] }
 0x267   : > { %5021 = vmatprep.subr.bf16.mxu1 %v6234_v11  ;;  %v2408_v33 = vsel %vm2397_vm0, %v2368_v21, 0 }
 0x268   : > { %v6387_v16 = vand.u32 4294901760, %v2408_v33 }
 0x26a   : > { %5023 = vmatpush3.bf16.msra.mxu1 %v6234_v11  ;;  %v6402_v31 = vsub.f32 %v2408_v33, %v6387_v16  ;;  %v2411_v11 = vsel %vm2397_vm0, %v2369_v29, 0 }
 0x26b   : > { %v6408_v45 = vand.u32 4294901760, %v2411_v11 }
 0x26c   : > { %v2547_v55 = vand.u32 4294901760, %v6402_v31 }
 0x26d   : > { %4587 = vmatmul.mubr.f32.vlgmr.msra.gmra.mrb[96].mxu1 %v6188_v7  ;;  %v6430_v13 = vsub.f32 %v2411_v11, %v6408_v45  ;;  %v2376_v11 = vld [vmem:[%s6857_s3 + $0x58] sm:$0xff] }
 0x26e   : > { %4589 = vmatprep.mubr.f32.mxu1 %v6200_v44  ;;  %v6436_v30 = vsub.f32 %v6402_v31, %v2547_v55 }
 0x271   : > { %4590 = vmatmul.mubr.f32.gmra.mrb[98].mxu1 %v6205_v1 }
 0x272   : > { %4763 = vmatprep.mubr.f32.mxu1 %v6353_v54 }
 0x340   : > { %v4588_v62 = vpop.f32.mrb[96].mxu1 }
 0x341   : > { %v5076_v43 = vadd.f32 %v4588_v62, %v1564_v25  ;;  %v2315_v38 = vpop.f32.mrb[97].mxu1  ;;  %v6446_v62 = vand.u32 4294901760, %v2417_v5 }
 0x342   : > { %v5077_v14 = vadd.f32 %v2315_v38, %v1563_v63  ;;  %v2529_v63 = vand.u32 4294901760, %v6419_v41 }
 0x343   : > { %v2338_v40 = vsub.f32 0.0, %v5076_v43  ;;  %v6466_v59 = vsub.f32 %v2417_v5, %v6446_v62 }
 0x344   : > { %v2337_v10 = vsub.f32 0.0, %v5077_v14  ;;  %v4591_v17 = vpop.f32.mrb[98].mxu1 }
 0x345   : > { %v2343_v61 = vmul.f32 1.442695, %v2338_v40  ;;  %v6371_v36 = vadd.f32 %v4591_v17, %v1566_v3  ;;  %v2327_v7 = vpop.f32.mrb[99].mxu1  ;;  %v2539_v3 = vand.u32 4294901760, %v6427_v46  ;;  %v2557_v40 = vand.u32 4294901760, %v6430_v13 }
 0x346   : > { %v2341_v28 = vmul.f32 1.442695, %v2337_v10  ;;  %v6373_v51 = vadd.f32 %v2327_v7, %v1565_v20  ;;  %v2423_v20 = vsel %vm2397_vm0, %v2373_v39, 0  ;;  %v6453_v7 = vand.u32 4294901760, %v2420_v58 }
 0x347   : > { %5209 = vpow2.f32 %v2343_v61  ;;  %v2340_v44 = vsub.f32 0.0, %v6371_v36  ;;  %v2549_v61 = vand.u32 4294901760, %v6436_v30  ;;  %v6468_v33 = vand.u32 4294901760, %v2423_v20 }
 0x348   : > { %5211 = vpow2.f32 %v2341_v28  ;;  %v2339_v57 = vsub.f32 0.0, %v6373_v51  ;;  %v2374_v28 = vld [vmem:[%s6857_s3 + $0x48] sm:$0xff] }
 0x349   : > { %v2347_v1 = vmul.f32 1.442695, %v2340_v44 }
 0x34a   : > { %v2345_v56 = vmul.f32 1.442695, %v2339_v57 }
 0x34b   : > { %5213 = vpow2.f32 %v2347_v1 }
 0x34c   : > { %5215 = vpow2.f32 %v2345_v56  ;;  %v2567_v56 = vand.u32 4294901760, %v6442_v49 }
 0x351   : > { %v5210_v52 = vpop.eup %5209 }
 0x352   : > { %v5212_v4 = vpop.eup %5211  ;;  %v2350_v8 = vadd.f32 1.0, %v5210_v52 }
 0x353   : > { %v2349_v0 = vadd.f32 1.0, %v5212_v4 }
 0x354   : > { %5217 = vrcp.f32 %v2350_v8  ;;  %v2426_v8 = vsel %vm2397_vm0, %v2374_v28, 0  ;;  %v2378_v28 = vld [vmem:[%s6857_s3 + $0x68] sm:$0xff] }
 0x355   : > { %v5214_v9 = vpop.eup %5213  ;;  %5219 = vrcp.f32 %v2349_v0  ;;  %v6489_v5 = vand.u32 4294901760, %v2426_v8  ;;  %v2438_v41 = vsel %vm2397_vm0, %v2378_v28, 0 }
 0x356   : > { %v5216_v53 = vpop.eup %5215  ;;  %v2352_v24 = vadd.f32 1.0, %v5214_v9  ;;  %v6478_v9 = vsub.f32 %v2420_v58, %v6453_v7 }
 0x357   : > { %v2351_v47 = vadd.f32 1.0, %v5216_v53  ;;  %v2429_v53 = vsel %vm2397_vm0, %v2375_v6, 0  ;;  %v2568_v6 = vsub.f32 %v6442_v49, %v2567_v56 }
 0x358   : > { %5221 = vrcp.f32 %v2352_v24 }
 0x359   : > { %5223 = vrcp.f32 %v2351_v47 }
 0x35e   : > { %v5218_v32 = vpop.eup %5217 }
 0x35f   : > { %v5220_v34 = vpop.eup %5219  ;;  %v2362_v12 = vmul.f32 %v5218_v32, %v5076_v43  ;;  %v2577_v32 = vand.u32 4294901760, %v6466_v59 }
 0x360   : > { %v2361_v35 = vmul.f32 %v5220_v34, %v5077_v14  ;;  %v2377_v34 = vld [vmem:[%s6857_s3 + $0x60] sm:$0xff] }
 0x361   : > { %v2450_v25 = vand.u32 4294901760, %v2362_v12 }
 0x362   : > { %v5222_v43 = vpop.eup %5221  ;;  %v2447_v38 = vand.u32 4294901760, %v2361_v35 }
 0x363   : > { %v5224_v10 = vpop.eup %5223  ;;  %v2684_v14 = vsub.f32 %v2362_v12, %v2450_v25  ;;  %v2364_v17 = vmul.f32 %v5222_v43, %v6371_v36  ;;  %v2558_v43 = vsub.f32 %v6430_v13, %v2557_v40 }
 0x364   : > { %v6458_v44 = vpack.c.bf16 %v2450_v25, %v2447_v38  ;;  %v2677_v57 = vsub.f32 %v2361_v35, %v2447_v38  ;;  %v2363_v1 = vmul.f32 %v5224_v10, %v6373_v51  ;;  %v6497_v35 = vsub.f32 %v2423_v20, %v6468_v33 }
 0x365   : > { %v2456_v36 = vand.u32 4294901760, %v2364_v17  ;;  %v2685_v21 = vand.u32 4294901760, %v2684_v14  ;;  %v6506_v38 = vand.u32 4294901760, %v2429_v53  ;;  %v2432_v10 = vsel %vm2397_vm0, %v2376_v11, 0 }
 0x366   : > { %v2453_v52 = vand.u32 4294901760, %v2363_v1  ;;  %5025 = vmatprep.subr.bf16.mxu0 %v6458_v44  ;;  %5072 = vmatprep.subr.bf16.mxu1 %v6458_v44  ;;  %v2678_v4 = vand.u32 4294901760, %v2677_v57  ;;  %v6472_v51 = vpack.c.bf16 %v2684_v14, %v2677_v57  ;;  %v2435_v20 = vsel %vm2397_vm0, %v2377_v34, 0 }
 0x367   : > { %v2698_v0 = vsub.f32 %v2364_v17, %v2456_v36  ;;  %5027 = vmatpush3.bf16.msra.mxu0 %v6458_v44  ;;  %5074 = vmatpush3.bf16.msra.mxu1 %v6458_v44  ;;  %v2686_v29 = vsub.f32 %v2684_v14, %v2685_v21  ;;  %v6536_v11 = vsub.f32 %v2429_v53, %v6506_v38  ;;  %v2569_v34 = vand.u32 4294901760, %v2568_v6 }
 0x368   : > { %v6481_v24 = vpack.c.bf16 %v2456_v36, %v2453_v52  ;;  %v2691_v26 = vsub.f32 %v2363_v1, %v2453_v52  ;;  %v2679_v47 = vsub.f32 %v2677_v57, %v2678_v4  ;;  %v6486_v2 = vpack.c.bf16 %v2685_v21, %v2678_v4  ;;  %v2379_v52 = vld [vmem:[%s6857_s3 + $0x70] sm:$0xff] }
 0x369   : > { %v2687_v18 = vand.u32 4294901760, %v2686_v29  ;;  %v2699_v50 = vand.u32 4294901760, %v2698_v0  ;;  %v2578_v36 = vsub.f32 %v6466_v59, %v2577_v32  ;;  %v2587_v21 = vand.u32 4294901760, %v6478_v9 }
 0x36a   : > { %5029 = vmatprep.subr.bf16.mxu0 %v6481_v24  ;;  %5073 = vmatprep.subr.bf16.mxu1 %v6481_v24  ;;  %v2680_v12 = vand.u32 4294901760, %v2679_v47  ;;  %v2692_v39 = vand.u32 4294901760, %v2691_v26  ;;  %v6499_v58 = vpack.c.bf16 %v2698_v0, %v2691_v26  ;;  %v6529_v29 = vsub.f32 %v2426_v8, %v6489_v5  ;;  %v2380_v8 = vld [vmem:[%s6857_s3 + $0x78] sm:$0xff] }
 0x36b   : > { %5031 = vmatpush3.bf16.msra.mxu0 %v6481_v24  ;;  %5075 = vmatpush3.bf16.msra.mxu1 %v6481_v24  ;;  %v2700_v25 = vsub.f32 %v2698_v0, %v2699_v50  ;;  %v2597_v0 = vand.u32 4294901760, %v6497_v35  ;;  %v2559_v47 = vand.u32 4294901760, %v2558_v43  ;;  %v2579_v46 = vand.u32 4294901760, %v2578_v36 }
 0x36c   : > { %v5032_v14 = vpack.c.bf16 %v2687_v18, %v2680_v12  ;;  %v2693_v17 = vsub.f32 %v2691_v26, %v2692_v39  ;;  %v6513_v57 = vpack.c.bf16 %v2699_v50, %v2692_v39  ;;  %v6531_v26 = vand.u32 4294901760, %v2432_v10 }
 0x36d   : > { %v2701_v1 = vand.u32 4294901760, %v2700_v25  ;;  %v6538_v18 = vand.u32 4294901760, %v2435_v20  ;;  %v2441_v50 = vsel %vm2397_vm0, %v2379_v52, 0  ;;  %v2598_v53 = vsub.f32 %v6497_v35, %v2597_v0 }
 0x36e   : > { %4601 = vmatmul.mubr.f32.vlgmr.msra.gmra.mrb[96].mxu0 %v2529_v63  ;;  %5033 = vmatprep.subr.bf16.mxu0 %v5032_v14  ;;  %v2694_v4 = vand.u32 4294901760, %v2693_v17  ;;  %v2607_v12 = vand.u32 4294901760, %v6529_v29  ;;  %v6557_v39 = vsub.f32 %v2432_v10, %v6531_v26  ;;  %v6559_v25 = vand.u32 4294901760, %v2438_v41 }
 0x36f   : > { %5035 = vmatpush3.bf16.msra.mxu0 %v5032_v14  ;;  %4603 = vmatprep.mubr.f32.mxu0 %v2539_v3  ;;  %v2588_v3 = vsub.f32 %v6478_v9, %v2587_v21  ;;  %v2617_v43 = vand.u32 4294901760, %v6536_v11  ;;  %v6563_v14 = vsub.f32 %v2435_v20, %v6538_v18  ;;  %v6565_v30 = vand.u32 4294901760, %v2441_v50 }
 0x370   : > { %v5036_v63 = vpack.c.bf16 %v2701_v1, %v2694_v4  ;;  %4764 = vmatmul.mubr.f32.vlgmr.msra.gmra.mrb[100].mxu1 %v6387_v16  ;;  %v2608_v10 = vsub.f32 %v6529_v29, %v2607_v12  ;;  %v2627_v28 = vand.u32 4294901760, %v6557_v39  ;;  %v6576_v20 = vsub.f32 %v2438_v41, %v6559_v25 }
 0x371   : > { %4766 = vmatprep.mubr.f32.mxu1 %v6408_v45  ;;  %v2589_v17 = vand.u32 4294901760, %v2588_v3  ;;  %v2599_v6 = vand.u32 4294901760, %v2598_v53  ;;  %v2618_v36 = vsub.f32 %v6536_v11, %v2617_v43  ;;  %v2637_v52 = vand.u32 4294901760, %v6563_v14 }
 0x372   : > { %4604 = vmatmul.mubr.f32.gmra.mrb[98].mxu0 %v2549_v61  ;;  %5037 = vmatprep.subr.bf16.mxu0 %v5036_v63  ;;  %v2444_v61 = vsel %vm2397_vm0, %v2380_v8, 0  ;;  %v6585_v4 = vsub.f32 %v2441_v50, %v6565_v30  ;;  %v2628_v41 = vsub.f32 %v6557_v39, %v2627_v28 }
 0x373   : > { %5039 = vmatpush3.bf16.msra.mxu0 %v5036_v63  ;;  %4606 = vmatprep.mubr.f32.mxu0 %v2559_v47  ;;  %v6578_v1 = vand.u32 4294901760, %v2444_v61  ;;  %v2609_v47 = vand.u32 4294901760, %v2608_v10  ;;  %v2647_v63 = vand.u32 4294901760, %v6576_v20  ;;  %v2638_v50 = vsub.f32 %v6563_v14, %v2637_v52 }
 0x374   : > { %5041 = vmatprep.subr.bf16.mxu0 %v6472_v51  ;;  %4767 = vmatmul.mubr.f32.gmra.mrb[102].mxu1 %v6414_v60  ;;  %v2629_v3 = vand.u32 4294901760, %v2628_v41 }
 0x375   : > { %4769 = vmatprep.mubr.f32.mxu1 %v6446_v62  ;;  %v6594_v8 = vsub.f32 %v2444_v61, %v6578_v1  ;;  %v2648_v53 = vsub.f32 %v6576_v20, %v2647_v63 }
 0x376   : > { %4607 = vmatmul.mubr.f32.gmra.mrb[100].mxu0 %v2569_v34  ;;  %v2619_v34 = vand.u32 4294901760, %v2618_v36 }
 0x377   : > { %4609 = vmatprep.mubr.f32.mxu0 %v2579_v46  ;;  %v2657_v46 = vand.u32 4294901760, %v6585_v4  ;;  %v2667_v61 = vand.u32 4294901760, %v6594_v8 }
 0x378   : > { %4770 = vmatmul.mubr.f32.gmra.mrb[104].mxu1 %v6453_v7 }
 0x379   : > { %4772 = vmatprep.mubr.f32.mxu1 %v6468_v33  ;;  %v2658_v10 = vsub.f32 %v6585_v4, %v2657_v46  ;;  %v2668_v36 = vsub.f32 %v6594_v8, %v2667_v61 }
 0x37a   : > { %4610 = vmatmul.mubr.f32.gmra.mrb[102].mxu0 %v2589_v17  ;;  %v2639_v17 = vand.u32 4294901760, %v2638_v50 }
 0x37b   : > { %4612 = vmatprep.mubr.f32.mxu0 %v2599_v6  ;;  %v2649_v6 = vand.u32 4294901760, %v2648_v53  ;;  %v2669_v41 = vand.u32 4294901760, %v2668_v36 }
 0x37c   : > { %4773 = vmatmul.mubr.f32.gmra.mrb[106].mxu1 %v6489_v5 }
 0x37d   : > { %4775 = vmatprep.mubr.f32.mxu1 %v6506_v38 }
 0x37e   : > { %4613 = vmatmul.mubr.f32.gmra.mrb[104].mxu0 %v2609_v47  ;;  %v2659_v47 = vand.u32 4294901760, %v2658_v10 }
 0x37f   : > { %4615 = vmatprep.mubr.f32.mxu0 %v2619_v34 }
 0x380   : > { %4776 = vmatmul.mubr.f32.gmra.mrb[108].mxu1 %v6531_v26 }
 0x381   : > { %4778 = vmatprep.mubr.f32.mxu1 %v6538_v18 }
 0x382   : > { %4616 = vmatmul.mubr.f32.gmra.mrb[106].mxu0 %v2629_v3  ;;  %v2392_v3 = vld [vmem:[%s6858_s4 + $0x58] sm:$0xff] }
 0x383   : > { %4618 = vmatprep.mubr.f32.mxu0 %v2639_v17  ;;  %v2391_v17 = vld [vmem:[%s6858_s4 + $0x50] sm:$0xff] }
 0x384   : > { %4779 = vmatmul.mubr.f32.gmra.mrb[110].mxu1 %v6559_v25 }
 0x385   : > { %4781 = vmatprep.mubr.f32.mxu1 %v6565_v30 }
 0x386   : > { %4619 = vmatmul.mubr.f32.gmra.mrb[108].mxu0 %v2649_v6 }
 0x387   : > { %4621 = vmatprep.mubr.f32.mxu0 %v2659_v47 }
 0x388   : > { %4782 = vmatmul.mubr.f32.gmra.mrb[112].mxu1 %v6578_v1 }
 0x38a   : > { %4622 = vmatmul.mubr.f32.gmra.mrb[110].mxu0 %v2669_v41 }
 0x38b   : > { %4632 = vmatprep.mubr.f32.mxu0 %v6343_v15 }
 0x38e   : > { %4633 = vmatmul.mubr.f32.vlgmr.msra.gmra.mrb[96].mxu0 %v6385_v27 }
 0x38f   : > { %5043 = vmatpush3.bf16.msra.mxu0 %v6472_v51  ;;  %4635 = vmatprep.mubr.f32.mxu0 %v6353_v54  ;;  %v2385_v51 = vld [vmem:[%s6858_s4 + $0x20] sm:$0xff] }
 0x390   : > { %5045 = vmatprep.subr.bf16.mxu0 %v6499_v58 }
 0x392   : > { %4636 = vmatmul.mubr.f32.gmra.mrb[98].mxu0 %v6387_v16 }
 0x393   : > { %5047 = vmatpush3.bf16.msra.mxu0 %v6499_v58  ;;  %4638 = vmatprep.mubr.f32.mxu0 %v6408_v45 }
 0x394   : > { %5049 = vmatprep.subr.bf16.mxu0 %v6458_v44 }
 0x396   : > { %4639 = vmatmul.mubr.f32.gmra.mrb[100].mxu0 %v6414_v60 }
 0x397   : > { %4641 = vmatprep.mubr.f32.mxu0 %v6446_v62 }
 0x39a   : > { %4642 = vmatmul.mubr.f32.gmra.mrb[102].mxu0 %v6453_v7 }
 0x39b   : > { %4644 = vmatprep.mubr.f32.mxu0 %v6468_v33 }
 0x39e   : > { %4645 = vmatmul.mubr.f32.gmra.mrb[104].mxu0 %v6489_v5 }
 0x39f   : > { %4647 = vmatprep.mubr.f32.mxu0 %v6506_v38 }
 0x3a2   : > { %4648 = vmatmul.mubr.f32.gmra.mrb[106].mxu0 %v6531_v26 }
 0x3a3   : > { %4650 = vmatprep.mubr.f32.mxu0 %v6538_v18 }
 0x3a6   : > { %4651 = vmatmul.mubr.f32.gmra.mrb[108].mxu0 %v6559_v25 }
 0x3a7   : > { %4653 = vmatprep.mubr.f32.mxu0 %v6565_v30 }
 0x3aa   : > { %4654 = vmatmul.mubr.f32.gmra.mrb[110].mxu0 %v6578_v1 }
 0x3ab   : > { %4664 = vmatprep.mubr.f32.mxu0 %v6346_v22 }
 0x3ae   : > { %4665 = vmatmul.mubr.f32.vlgmr.msra.gmra.mrb[96].mxu0 %v6393_v23 }
 0x3af   : > { %5051 = vmatpush3.bf16.msra.mxu0 %v6458_v44  ;;  %4667 = vmatprep.mubr.f32.mxu0 %v6396_v37 }
 0x3b0   : > { %5053 = vmatprep.subr.bf16.mxu0 %v6481_v24 }
 0x3b2   : > { %4668 = vmatmul.mubr.f32.gmra.mrb[98].mxu0 %v6402_v31 }
 0x3b3   : > { %5055 = vmatpush3.bf16.msra.mxu0 %v6481_v24  ;;  %4670 = vmatprep.mubr.f32.mxu0 %v6430_v13 }
 0x3b4   : > { %5057 = vmatprep.subr.bf16.mxu0 %v6486_v2 }
 0x3b6   : > { %4671 = vmatmul.mubr.f32.gmra.mrb[100].mxu0 %v6442_v49  ;;  %v2384_v49 = vld [vmem:[%s6858_s4 + $0x18] sm:$0xff] }
 0x3b7   : > { %4673 = vmatprep.mubr.f32.mxu0 %v6466_v59  ;;  %v2386_v59 = vld [vmem:[%s6858_s4 + $0x28] sm:$0xff] }
 0x3ba   : > { %4674 = vmatmul.mubr.f32.gmra.mrb[102].mxu0 %v6478_v9 }
 0x3bb   : > { %4676 = vmatprep.mubr.f32.mxu0 %v6497_v35 }
 0x3be   : > { %4677 = vmatmul.mubr.f32.gmra.mrb[104].mxu0 %v6529_v29 }
 0x3bf   : > { %4679 = vmatprep.mubr.f32.mxu0 %v6536_v11 }
 0x3c2   : > { %4680 = vmatmul.mubr.f32.gmra.mrb[106].mxu0 %v6557_v39 }
 0x3c3   : > { %4682 = vmatprep.mubr.f32.mxu0 %v6563_v14  ;;  %v2390_v14 = vld [vmem:[%s6858_s4 + $0x48] sm:$0xff] }
 0x3c6   : > { %4683 = vmatmul.mubr.f32.gmra.mrb[108].mxu0 %v6576_v20  ;;  %v2389_v20 = vld [vmem:[%s6858_s4 + $0x40] sm:$0xff] }
 0x3c7   : > { %4685 = vmatprep.mubr.f32.mxu0 %v6585_v4 }
 0x3ca   : > { %4686 = vmatmul.mubr.f32.gmra.mrb[110].mxu0 %v6594_v8 }
 0x3cb   : > { %4696 = vmatprep.mubr.f32.mxu0 %v2517_v19 }
 0x3ce   : > { %4697 = vmatmul.mubr.f32.vlgmr.msra.gmra.mrb[96].mxu0 %v2527_v42 }
 0x3cf   : > { %5059 = vmatpush3.bf16.msra.mxu0 %v6486_v2  ;;  %4699 = vmatprep.mubr.f32.mxu0 %v2537_v48 }
 0x3d0   : > { %5061 = vmatprep.subr.bf16.mxu0 %v6513_v57 }
 0x3d2   : > { %4700 = vmatmul.mubr.f32.gmra.mrb[98].mxu0 %v2547_v55 }
 0x3d3   : > { %5063 = vmatpush3.bf16.msra.mxu0 %v6513_v57  ;;  %4702 = vmatprep.mubr.f32.mxu0 %v2557_v40 }
 0x3d4   : > { %5065 = vmatprep.subr.bf16.mxu0 %v6458_v44 }
 0x3d6   : > { %4703 = vmatmul.mubr.f32.gmra.mrb[100].mxu0 %v2567_v56 }
 0x3d7   : > { %4705 = vmatprep.mubr.f32.mxu0 %v2577_v32 }
 0x3da   : > { %4706 = vmatmul.mubr.f32.gmra.mrb[102].mxu0 %v2587_v21 }
 0x3db   : > { %4708 = vmatprep.mubr.f32.mxu0 %v2597_v0  ;;  %v2387_v0 = vld [vmem:[%s6858_s4 + $0x30] sm:$0xff] }
 0x3de   : > { %4709 = vmatmul.mubr.f32.gmra.mrb[104].mxu0 %v2607_v12 }
 0x3df   : > { %4711 = vmatprep.mubr.f32.mxu0 %v2617_v43 }
 0x3e2   : > { %4712 = vmatmul.mubr.f32.gmra.mrb[106].mxu0 %v2627_v28 }
 0x3e3   : > { %4714 = vmatprep.mubr.f32.mxu0 %v2637_v52 }
 0x3e6   : > { %4715 = vmatmul.mubr.f32.gmra.mrb[108].mxu0 %v2647_v63 }
 0x3e7   : > { %4717 = vmatprep.mubr.f32.mxu0 %v2657_v46 }
 0x3ea   : > { %4718 = vmatmul.mubr.f32.gmra.mrb[110].mxu0 %v2667_v61 }
 0x3eb   : > { %4728 = vmatprep.mubr.f32.mxu0 %v6343_v15 }
 0x3ee   : > { %4729 = vmatmul.mubr.f32.vlgmr.msra.gmra.mrb[96].mxu0 %v6385_v27 }
 0x3ef   : > { %5067 = vmatpush3.bf16.msra.mxu0 %v6458_v44  ;;  %4731 = vmatprep.mubr.f32.mxu0 %v6353_v54 }
 0x3f0   : > { %5069 = vmatprep.subr.bf16.mxu0 %v6481_v24 }
 0x3f2   : > { %4732 = vmatmul.mubr.f32.gmra.mrb[98].mxu0 %v6387_v16 }
 0x3f3   : > { %5071 = vmatpush3.bf16.msra.mxu0 %v6481_v24  ;;  %4734 = vmatprep.mubr.f32.mxu0 %v6408_v45 }
 0x3f6   : > { %4735 = vmatmul.mubr.f32.gmra.mrb[100].mxu0 %v6414_v60 }
 0x3f7   : > { %4737 = vmatprep.mubr.f32.mxu0 %v6446_v62  ;;  %v2383_v62 = vld [vmem:[%s6858_s4 + $0x10] sm:$0xff] }
 0x3fa   : > { %4738 = vmatmul.mubr.f32.gmra.mrb[102].mxu0 %v6453_v7 }
 0x3fb   : > { %4740 = vmatprep.mubr.f32.mxu0 %v6468_v33 }
 0x3fe   : > { %4741 = vmatmul.mubr.f32.gmra.mrb[104].mxu0 %v6489_v5 }
 0x3ff   : > { %4743 = vmatprep.mubr.f32.mxu0 %v6506_v38  ;;  %v2388_v38 = vld [vmem:[%s6858_s4 + $0x38] sm:$0xff] }
 0x402   : > { %4744 = vmatmul.mubr.f32.gmra.mrb[106].mxu0 %v6531_v26 }
 0x403   : > { %4746 = vmatprep.mubr.f32.mxu0 %v6538_v18 }
 0x406   : > { %4747 = vmatmul.mubr.f32.gmra.mrb[108].mxu0 %v6559_v25 }
 0x407   : > { %4749 = vmatprep.mubr.f32.mxu0 %v6565_v30 }
 0x40a   : > { %4750 = vmatmul.mubr.f32.gmra.mrb[110].mxu0 %v6578_v1 }
 0x40b   : > { %4760 = vmatprep.mubr.f32.mxu0 %v6343_v15 }
 0x40e   : > { %4761 = vmatmul.mubr.f32.vlgmr.msra.gmra.mrb[96].mxu0 %v6385_v27  ;;  %v5331_v27 = vmov 0  }
 0x40f   : > { %5207 = vset.pattern.permute.xlu1 %v5331_v27  ;;  %5208 = vset.pattern.permute.xlu0 %v5331_v27 }
 0x443   : > { %v4765_v22 = vpop.f32.mrb[100].mxu1 }
 0x444   : > { %v3494_v19 = vpop.f32.mrb[101].mxu1 }
 0x447   : > { %v4768_v54 = vpop.f32.mrb[102].mxu1 }
 0x448   : > { %v3506_v16 = vpop.f32.mrb[103].mxu1 }
 0x44b   : > { %v4771_v23 = vpop.f32.mrb[104].mxu1 }
 0x44c   : > { %v3518_v37 = vpop.f32.mrb[105].mxu1 }
 0x44f   : > { %v4774_v31 = vpop.f32.mrb[106].mxu1 }
 0x450   : > { %v3530_v42 = vpop.f32.mrb[107].mxu1 }
 0x453   : > { %v6714_v48 = vpop.f32.mrb[108].mxu1 }
 0x454   : > { %v6716_v45 = vpop.f32.mrb[109].mxu1 }
 0x457   : > { %v6718_v55 = vpop.f32.mrb[110].mxu1 }
 0x458   : > { %v6720_v60 = vpop.f32.mrb[111].mxu1 }
 0x45b   : > { %v6722_v13 = vpop.f32.mrb[112].mxu1 }
 0x45c   : > { %v6724_v15 = vpop.f32.mrb[113].mxu1 }
 0x4c5   : > { %v4733_v40 = vpop.f32.mrb[98].mxu0 }
 0x4c6   : > { %v5082_v7 = vadd.f32 %v4733_v40, %v2384_v49  ;;  %v3329_v44 = vpop.f32.mrb[99].mxu0 }
 0x4c7   : > { %v5084_v56 = vadd.f32 %v3329_v44, %v2383_v62 }
 0x4c8   : > { %v5083_v33 = vadd.f32 %v5082_v7, %v4765_v22 }
 0x4c9   : > { %v5085_v9 = vadd.f32 %v5084_v56, %v3494_v19  ;;  %v4736_v24 = vpop.f32.mrb[100].mxu0 }
 0x4ca   : > { %v3579_v2 = vsub.f32 0.0, %v5083_v33  ;;  %v5086_v32 = vadd.f32 %v4736_v24, %v2386_v59  ;;  %v3341_v5 = vpop.f32.mrb[101].mxu0 }
 0x4cb   : > { %v3578_v35 = vsub.f32 0.0, %v5085_v9  ;;  %v5088_v58 = vadd.f32 %v3341_v5, %v2385_v51 }
 0x4cc   : > { %v3598_v57 = vmul.f32 1.442695, %v3579_v2  ;;  %v5087_v21 = vadd.f32 %v5086_v32, %v4768_v54 }
 0x4cd   : > { %v3596_v29 = vmul.f32 1.442695, %v3578_v35  ;;  %v5089_v26 = vadd.f32 %v5088_v58, %v3506_v16  ;;  %v4739_v11 = vpop.f32.mrb[102].mxu0  ;;  %v2394_v16 = vld [vmem:[%s6858_s4 + $0x68] sm:$0xff] }
 0x4ce   : > { %5225 = vpow2.f32 %v3598_v57  ;;  %v3581_v18 = vsub.f32 0.0, %v5087_v21  ;;  %v5090_v12 = vadd.f32 %v4739_v11, %v2388_v38  ;;  %v3353_v39 = vpop.f32.mrb[103].mxu0 }
 0x4cf   : > { %5227 = vpow2.f32 %v3596_v29  ;;  %v3580_v25 = vsub.f32 0.0, %v5089_v26  ;;  %v5092_v43 = vadd.f32 %v3353_v39, %v2387_v0 }
 0x4d0   : > { %v3602_v30 = vmul.f32 1.442695, %v3581_v18  ;;  %v5091_v28 = vadd.f32 %v5090_v12, %v4771_v23 }
 0x4d1   : > { %v3600_v1 = vmul.f32 1.442695, %v3580_v25  ;;  %v5093_v52 = vadd.f32 %v5092_v43, %v3518_v37  ;;  %v4742_v4 = vpop.f32.mrb[104].mxu0 }
 0x4d2   : > { %5229 = vpow2.f32 %v3602_v30  ;;  %v3583_v63 = vsub.f32 0.0, %v5091_v28  ;;  %v5094_v8 = vadd.f32 %v4742_v4, %v2390_v14  ;;  %v3365_v34 = vpop.f32.mrb[105].mxu0 }
 0x4d3   : > { %5231 = vpow2.f32 %v3600_v1  ;;  %v3582_v50 = vsub.f32 0.0, %v5093_v52  ;;  %v5096_v46 = vadd.f32 %v3365_v34, %v2389_v20 }
 0x4d4   : > { %v3606_v53 = vmul.f32 1.442695, %v3583_v63  ;;  %v5095_v61 = vadd.f32 %v5094_v8, %v4774_v31 }
 0x4d5   : > { %v3604_v10 = vmul.f32 1.442695, %v3582_v50  ;;  %v5097_v6 = vadd.f32 %v5096_v46, %v3530_v42  ;;  %v4745_v36 = vpop.f32.mrb[106].mxu0  ;;  %v2393_v42 = vld [vmem:[%s6858_s4 + $0x60] sm:$0xff] }
 0x4d6   : > { %5233 = vpow2.f32 %v3606_v53  ;;  %v3585_v47 = vsub.f32 0.0, %v5095_v61  ;;  %v5098_v41 = vadd.f32 %v4745_v36, %v2392_v3  ;;  %v3377_v22 = vpop.f32.mrb[107].mxu0 }
 0x4d7   : > { %5235 = vpow2.f32 %v3604_v10  ;;  %v3584_v19 = vsub.f32 0.0, %v5097_v6  ;;  %v5100_v54 = vadd.f32 %v3377_v22, %v2391_v17 }
 0x4d8   : > { %v5226_v23 = vpop.eup %5225  ;;  %v3610_v37 = vmul.f32 1.442695, %v3585_v47  ;;  %v5099_v31 = vadd.f32 %v5098_v41, %v6714_v48  ;;  %v2396_v48 = vld [vmem:[%s6858_s4 + $0x78] sm:$0xff] }
 0x4d9   : > { %v5228_v27 = vpop.eup %5227  ;;  %v3627_v49 = vadd.f32 1.0, %v5226_v23  ;;  %v3608_v62 = vmul.f32 1.442695, %v3584_v19  ;;  %v5101_v40 = vadd.f32 %v5100_v54, %v6716_v45  ;;  %v4748_v7 = vpop.f32.mrb[108].mxu0  ;;  %v2395_v45 = vld [vmem:[%s6858_s4 + $0x70] sm:$0xff] }
 0x4da   : > { %5237 = vpow2.f32 %v3610_v37  ;;  %v3587_v44 = vsub.f32 0.0, %v5099_v31  ;;  %v5102_v56 = vadd.f32 %v4748_v7, %v2394_v16  ;;  %v3389_v59 = vpop.f32.mrb[109].mxu0  ;;  %v3626_v33 = vadd.f32 1.0, %v5228_v27 }
 0x4db   : > { %5239 = vrcp.f32 %v3627_v49  ;;  %v3586_v51 = vsub.f32 0.0, %v5101_v40  ;;  %v5104_v9 = vadd.f32 %v3389_v59, %v2393_v42 }
 0x4dc   : > { %v5230_v24 = vpop.eup %5229  ;;  %v3614_v2 = vmul.f32 1.442695, %v3587_v44  ;;  %v5103_v32 = vadd.f32 %v5102_v56, %v6718_v55  ;;  %5241 = vpow2.f32 %v3608_v62  ;;  %v2382_v55 = vld [vmem:[%s6858_s4 + $0x8] sm:$0xff] }
 0x4dd   : > { %v5232_v5 = vpop.eup %5231  ;;  %v3612_v35 = vmul.f32 1.442695, %v3586_v51  ;;  %v5105_v58 = vadd.f32 %v5104_v9, %v6720_v60  ;;  %v4751_v38 = vpop.f32.mrb[110].mxu0  ;;  %v3629_v26 = vadd.f32 1.0, %v5230_v24  ;;  %v2381_v60 = vld [vmem:[%s6858_s4] sm:$0xff] }
 0x4de   : > { %v3628_v57 = vadd.f32 1.0, %v5232_v5  ;;  %5243 = vpow2.f32 %v3614_v2  ;;  %v3589_v21 = vsub.f32 0.0, %v5103_v32  ;;  %v5106_v0 = vadd.f32 %v4751_v38, %v2396_v48  ;;  %v3401_v29 = vpop.f32.mrb[111].mxu0 }
 0x4df   : > { %5245 = vrcp.f32 %v3626_v33  ;;  %v3588_v11 = vsub.f32 0.0, %v5105_v58  ;;  %v5108_v18 = vadd.f32 %v3401_v29, %v2395_v45 }
 0x4e0   : > { %v5234_v12 = vpop.eup %5233  ;;  %5247 = vrcp.f32 %v3628_v57  ;;  %v3618_v39 = vmul.f32 1.442695, %v3589_v21  ;;  %v5107_v25 = vadd.f32 %v5106_v0, %v6722_v13  ;;  %v5289_v0 = vld [vmem:[%s5384_s23 + $0x30] sm:$0xff] }
 0x4e1   : > { %v5236_v43 = vpop.eup %5235  ;;  %5249 = vpow2.f32 %v3612_v35  ;;  %v3616_v14 = vmul.f32 1.442695, %v3588_v11  ;;  %v5109_v30 = vadd.f32 %v5108_v18, %v6724_v15  ;;  %v4762_v28 = vpop.f32.mrb[96].mxu0  ;;  %v3631_v63 = vadd.f32 1.0, %v5234_v12 }
 0x4e2   : > { %v3630_v20 = vadd.f32 1.0, %v5236_v43  ;;  %5251 = vpow2.f32 %v3618_v39  ;;  %v3591_v1 = vsub.f32 0.0, %v5107_v25  ;;  %v5080_v52 = vadd.f32 %v4762_v28, %v2382_v55  ;;  %v3482_v4 = vpop.f32.mrb[97].mxu0  ;;  %v5291_v55 = vld [vmem:[%s5384_s23 + $0x20] sm:$0xff]  ;;  %v5292_v39 = vld [vmem:[%s5384_s23 + $0x28] sm:$0xff] }
 0x4e3   : > { %5253 = vrcp.f32 %v3629_v26  ;;  %v5081_v8 = vadd.f32 %v3482_v4, %v2381_v60  ;;  %v3590_v3 = vsub.f32 0.0, %v5109_v30  ;;  %v5290_v26 = vld [vmem:[%s5384_s23 + $0x38] sm:$0xff]  ;;  %v5293_v43 = vld [vmem:[%s5384_s23 + $0x40] sm:$0xff]  ;;  %v5294_v30 = vld [vmem:[%s5384_s23 + $0x48] sm:$0xff] }
 0x4e4   : > { %v5238_v34 = vpop.eup %5237  ;;  %5255 = vrcp.f32 %v3630_v20  ;;  %v3622_v13 = vmul.f32 1.442695, %v3591_v1  ;;  %v3577_v50 = vsub.f32 0.0, %v5080_v52  ;;  %v5295_v1 = vld [vmem:[%s5384_s23 + $0x50] sm:$0xff]  ;;  %v5296_v4 = vld [vmem:[%s5384_s23 + $0x58] sm:$0xff] }
 0x4e5   : > { %v5240_v46 = vpop.eup %5239  ;;  %5257 = vpow2.f32 %v3616_v14  ;;  %v3576_v53 = vsub.f32 0.0, %v5081_v8  ;;  %v3633_v17 = vadd.f32 1.0, %v5238_v34  ;;  %v3620_v41 = vmul.f32 1.442695, %v3590_v3  ;;  %v5297_v34 = vld [vmem:[%s5384_s23 + $0x60] sm:$0xff] }
 0x4e6   : > { %5259 = vpow2.f32 %v3622_v13  ;;  %v3594_v61 = vmul.f32 1.442695, %v3577_v50  ;;  %3689 = vperm.xlu1 %5207, %v5240_v46   ;;  %v5242_v15 = vpop.eup %5241  ;;  %v5298_v50 = vld [vmem:[%s5384_s23 + $0x68] sm:$0xff] }
 0x4e7   : > { %5261 = vrcp.f32 %v3631_v63  ;;  %v3632_v6 = vadd.f32 1.0, %v5242_v15  ;;  %v3592_v36 = vmul.f32 1.442695, %v3576_v53  ;;  %v5299_v53 = vld [vmem:[%s5384_s23 + $0x70] sm:$0xff]  ;;  %v5300_v15 = vld [vmem:[%s5384_s23 + $0x78] sm:$0xff] }
 0x4e8   : > { %v5244_v10 = vpop.eup %5243  ;;  %5263 = vpow2.f32 %v3594_v61 }
 0x4e9   : > { %v5246_v47 = vpop.eup %5245  ;;  %5265 = vrcp.f32 %v3632_v6  ;;  %v3635_v54 = vadd.f32 1.0, %v5244_v10  ;;  %v5301_v6 = vld [vmem:[%s5384_s23 + $0x80] sm:$0xff] }
 0x4ea   : > { %v5248_v22 = vpop.eup %5247  ;;  %3684 = vperm.xlu1 %5207, %v5246_v47   ;;  %5267 = vrcp.f32 %v3633_v17  ;;  %v5302_v47 = vld [vmem:[%s5384_s23 + $0x88] sm:$0xff] }
 0x4eb   : > { %v5250_v19 = vpop.eup %5249  ;;  %3694 = vperm.xlu0 %5208, %v5248_v22   ;;  %5269 = vpow2.f32 %v3592_v36 }
 0x4ec   : > { %v5252_v16 = vpop.eup %5251  ;;  %v3634_v23 = vadd.f32 1.0, %v5250_v19  ;;  %5271 = vpow2.f32 %v3620_v41  ;;  %v5303_v19 = vld [vmem:[%s5384_s23 + $0x90] sm:$0xff] }
 0x4ed   : > { %v5254_v37 = vpop.eup %5253  ;;  %v3637_v27 = vadd.f32 1.0, %v5252_v16  ;;  %v5304_v16 = vld [vmem:[%s5384_s23 + $0x98] sm:$0xff] }
 0x4ee   : > { %v5256_v31 = vpop.eup %5255  ;;  %5273 = vrcp.f32 %v3634_v23  ;;  %3699 = vperm.xlu1 %5207, %v5254_v37  }
 0x4ef   : > { %v5258_v42 = vpop.eup %5257  ;;  %5275 = vrcp.f32 %v3635_v54  ;;  %3704 = vperm.xlu0 %5208, %v5256_v31   ;;  %v5305_v31 = vld [vmem:[%s5384_s23 + $0xa0] sm:$0xff] }
 0x4f0   : > { %v5260_v49 = vpop.eup %5259  ;;  %v3636_v62 = vadd.f32 1.0, %v5258_v42 }
 0x4f1   : > { %v5262_v40 = vpop.eup %5261  ;;  %v3639_v44 = vadd.f32 1.0, %v5260_v49 }
 0x4f2   : > { %5277 = vrcp.f32 %v3636_v62  ;;  %3709 = vperm.xlu1 %5207, %v5262_v40   ;;  %v5264_v7 = vpop.eup %5263  ;;  %v5307_v40 = vld [vmem:[%s5384_s23 + $0xb0] sm:$0xff] }
 0x4f3   : > { %5279 = vrcp.f32 %v3637_v27  ;;  %v5266_v56 = vpop.eup %5265  ;;  %v3625_v59 = vadd.f32 1.0, %v5264_v7  ;;  %v5306_v27 = vld [vmem:[%s5384_s23 + $0xa8] sm:$0xff] }
 0x4f4   : > { %v5268_v33 = vpop.eup %5267  ;;  %3714 = vperm.xlu0 %5208, %v5266_v56  }
 0x4f5   : > { %v5270_v51 = vpop.eup %5269  ;;  %5281 = vrcp.f32 %v3625_v59 }
 0x4f6   : > { %3719 = vperm.xlu1 %5207, %v5268_v33   ;;  %v5272_v9 = vpop.eup %5271  ;;  %5283 = vrcp.f32 %v3639_v44  ;;  %v3624_v48 = vadd.f32 1.0, %v5270_v51  ;;  %v5308_v44 = vld [vmem:[%s5384_s23 + $0xb8] sm:$0xff]  ;;  %v5309_v33 = vld [vmem:[%s5384_s23 + $0xc0] sm:$0xff] }
 0x4f7   : > { %v3638_v32 = vadd.f32 1.0, %v5272_v9  ;;  %v5310_v9 = vld [vmem:[%s5384_s23 + $0xc8] sm:$0xff] }
 0x4f8   : > { %v5274_v24 = vpop.eup %5273  ;;  %5285 = vrcp.f32 %v3624_v48 }
 0x4f9   : > { %v5276_v2 = vpop.eup %5275  ;;  %3724 = vperm.xlu0 %5208, %v5274_v24   ;;  %5287 = vrcp.f32 %v3638_v32 }
 0x4fa   : > { %3729 = vperm.xlu1 %5207, %v5276_v2   ;;  %v5311_v2 = vld [vmem:[%s5384_s23 + $0xd0] sm:$0xff] }
 0x4fc   : > { %v5278_v45 = vpop.eup %5277 }
 0x4fd   : > { %v5280_v5 = vpop.eup %5279  ;;  %3734 = vperm.xlu0 %5208, %v5278_v45   ;;  %v5312_v45 = vld [vmem:[%s5384_s23 + $0xd8] sm:$0xff] }
 0x4fe   : > { %3739 = vperm.xlu1 %5207, %v5280_v5  }
 0x4ff   : > { %v5282_v35 = vpop.eup %5281 }
 0x500   : > { %v5284_v58 = vpop.eup %5283 }
 0x501   : > { %3679 = vperm.xlu0 %5208, %v5282_v35  }
 0x502   : > { %3749 = vperm.xlu1 %5207, %v5284_v58   ;;  %v5286_v38 = vpop.eup %5285  ;;  %v5313_v58 = vld [vmem:[%s5384_s23 + $0x10] sm:$0xff] }
 0x503   : > { %v5288_v57 = vpop.eup %5287 }
 0x505   : > { %3674 = vperm.xlu0 %5208, %v5286_v38  }
 0x509   : > { %3744 = vperm.xlu0 %5208, %v5288_v57   ;;  %v5314_v57 = vld [vmem:[%s5384_s23 + $0x18] sm:$0xff] }
 0x565   : > { %v3690_v21 = vpop.permute.xlu1 %3689 }
 0x566   : > { %v3758_v29 = vmul.f32 %v5289_v0, %v3690_v21  ;;  %v3759_v11 = vmul.f32 %v5290_v26, %v3690_v21 }
 0x568   : > { %3790 = vst [vmem:[%s6785_s21 + $0x30] sm:$0xff] %v3758_v29  ;;  %3791 = vst [vmem:[%s6785_s21 + $0x38] sm:$0xff] %v3759_v11  ;;  %v5315_v29 = vld [vmem:[%s5384_s23 + $0xf0] sm:$0xff]  ;;  %v5316_v11 = vld [vmem:[%s5384_s23 + $0xf8] sm:$0xff] }
 0x569   : > { %v3685_v18 = vpop.permute.xlu1 %3684 }
 0x56a   : > { %v3756_v12 = vmul.f32 %v5291_v55, %v3685_v18  ;;  %v3757_v25 = vmul.f32 %v5292_v39, %v3685_v18  ;;  %v3695_v60 = vpop.permute.xlu0 %3694 }
 0x56b   : > { %v3760_v14 = vmul.f32 %v5293_v43, %v3695_v60  ;;  %v3761_v28 = vmul.f32 %v5294_v30, %v3695_v60 }
 0x56c   : > { %3788 = vst [vmem:[%s6785_s21 + $0x20] sm:$0xff] %v3756_v12  ;;  %3789 = vst [vmem:[%s6785_s21 + $0x28] sm:$0xff] %v3757_v25  ;;  %v5317_v12 = vld [vmem:[%s5384_s23] sm:$0xff]  ;;  %v5318_v25 = vld [vmem:[%s5384_s23 + $0x8] sm:$0xff] }
 0x56d   : > { %3792 = vst [vmem:[%s6785_s21 + $0x40] sm:$0xff] %v3760_v14  ;;  %3793 = vst [vmem:[%s6785_s21 + $0x48] sm:$0xff] %v3761_v28  ;;  %v3700_v20 = vpop.permute.xlu1 %3699  ;;  %v5319_v14 = vld [vmem:[%s5384_s23 + $0xe0] sm:$0xff]  ;;  %v5320_v28 = vld [vmem:[%s5384_s23 + $0xe8] sm:$0xff] }
 0x56e   : > { %v3762_v52 = vmul.f32 %v5295_v1, %v3700_v20  ;;  %v3763_v63 = vmul.f32 %v5296_v4, %v3700_v20  ;;  %v3705_v8 = vpop.permute.xlu0 %3704 }
 0x56f   : > { %v3764_v13 = vmul.f32 %v5297_v34, %v3705_v8  ;;  %v3765_v46 = vmul.f32 %v5298_v50, %v3705_v8 }
 0x570   : > { %3794 = vst [vmem:[%s6785_s21 + $0x50] sm:$0xff] %v3762_v52  ;;  %3795 = vst [vmem:[%s6785_s21 + $0x58] sm:$0xff] %v3763_v63 }
 0x571   : > { %3796 = vst [vmem:[%s6785_s21 + $0x60] sm:$0xff] %v3764_v13  ;;  %3797 = vst [vmem:[%s6785_s21 + $0x68] sm:$0xff] %v3765_v46  ;;  %v3710_v3 = vpop.permute.xlu1 %3709 }
 0x572   : > { %v3766_v61 = vmul.f32 %v5299_v53, %v3710_v3  ;;  %v3767_v17 = vmul.f32 %v5300_v15, %v3710_v3 }
 0x573   : > { %v3715_v10 = vpop.permute.xlu0 %3714 }
 0x574   : > { %3798 = vst [vmem:[%s6785_s21 + $0x70] sm:$0xff] %v3766_v61  ;;  %3799 = vst [vmem:[%s6785_s21 + $0x78] sm:$0xff] %v3767_v17  ;;  %v3768_v36 = vmul.f32 %v5301_v6, %v3715_v10  ;;  %v3769_v41 = vmul.f32 %v5302_v47, %v3715_v10 }
 0x575   : > { %v3720_v22 = vpop.permute.xlu1 %3719 }
 0x576   : > { %v3770_v54 = vmul.f32 %v5303_v19, %v3720_v22  ;;  %v3771_v23 = vmul.f32 %v5304_v16, %v3720_v22  ;;  %3800 = vst [vmem:[%s6785_s21 + $0x80] sm:$0xff] %v3768_v36  ;;  %3801 = vst [vmem:[%s6785_s21 + $0x88] sm:$0xff] %v3769_v41 }
 0x578   : > { %3802 = vst [vmem:[%s6785_s21 + $0x90] sm:$0xff] %v3770_v54  ;;  %3803 = vst [vmem:[%s6785_s21 + $0x98] sm:$0xff] %v3771_v23  ;;  %v3725_v37 = vpop.permute.xlu0 %3724 }
 0x579   : > { %v3772_v42 = vmul.f32 %v5305_v31, %v3725_v37  ;;  %v3773_v49 = vmul.f32 %v5306_v27, %v3725_v37  ;;  %v3730_v62 = vpop.permute.xlu1 %3729 }
 0x57a   : > { %v3774_v7 = vmul.f32 %v5307_v40, %v3730_v62  ;;  %v3775_v56 = vmul.f32 %v5308_v44, %v3730_v62 }
 0x57b   : > { %3804 = vst [vmem:[%s6785_s21 + $0xa0] sm:$0xff] %v3772_v42  ;;  %3805 = vst [vmem:[%s6785_s21 + $0xa8] sm:$0xff] %v3773_v49 }
 0x57c   : > { %3806 = vst [vmem:[%s6785_s21 + $0xb0] sm:$0xff] %v3774_v7  ;;  %3807 = vst [vmem:[%s6785_s21 + $0xb8] sm:$0xff] %v3775_v56  ;;  %v3735_v59 = vpop.permute.xlu0 %3734 }
 0x57d   : > { %v3776_v51 = vmul.f32 %v5309_v33, %v3735_v59  ;;  %v3777_v48 = vmul.f32 %v5310_v9, %v3735_v59  ;;  %v3740_v24 = vpop.permute.xlu1 %3739 }
 0x57e   : > { %v3778_v32 = vmul.f32 %v5311_v2, %v3740_v24  ;;  %v3779_v5 = vmul.f32 %v5312_v45, %v3740_v24 }
 0x57f   : > { %3808 = vst [vmem:[%s6785_s21 + $0xc0] sm:$0xff] %v3776_v51  ;;  %3809 = vst [vmem:[%s6785_s21 + $0xc8] sm:$0xff] %v3777_v48 }
 0x580   : > { %3810 = vst [vmem:[%s6785_s21 + $0xd0] sm:$0xff] %v3778_v32  ;;  %3811 = vst [vmem:[%s6785_s21 + $0xd8] sm:$0xff] %v3779_v5  ;;  %v3680_v35 = vpop.permute.xlu0 %3679 }
 0x581   : > { %v3754_v38 = vmul.f32 %v5313_v58, %v3680_v35  ;;  %v3755_v21 = vmul.f32 %v5314_v57, %v3680_v35  ;;  %v3750_v0 = vpop.permute.xlu1 %3749 }
 0x582   : > { %v3782_v26 = vmul.f32 %v5315_v29, %v3750_v0  ;;  %v3783_v18 = vmul.f32 %v5316_v11, %v3750_v0 }
 0x583   : > { %3786 = vst [vmem:[%s6785_s21 + $0x10] sm:$0xff] %v3754_v38  ;;  %3787 = vst [vmem:[%s6785_s21 + $0x18] sm:$0xff] %v3755_v21 }
 0x584   : > { %3814 = vst [vmem:[%s6785_s21 + $0xf0] sm:$0xff] %v3782_v26  ;;  %3815 = vst [vmem:[%s6785_s21 + $0xf8] sm:$0xff] %v3783_v18  ;;  %v3675_v55 = vpop.permute.xlu0 %3674 }
 0x585   : > { %v3752_v39 = vmul.f32 %v5317_v12, %v3675_v55  ;;  %v3753_v60 = vmul.f32 %v5318_v25, %v3675_v55 }
 0x587   : > { %3784 = vst [vmem:[%s6785_s21] sm:$0xff] %v3752_v39  ;;  %3785 = vst [vmem:[%s6785_s21 + $0x8] sm:$0xff] %v3753_v60 }
 0x588   : > { %v3745_v43 = vpop.permute.xlu0 %3744 }
 0x589   : > { %v3780_v30 = vmul.f32 %v5319_v14, %v3745_v43  ;;  %v3781_v20 = vmul.f32 %v5320_v28, %v3745_v43 }
 0x58b   : > { %3812 = vst [vmem:[%s6785_s21 + $0xe0] sm:$0xff] %v3780_v30  ;;  %3813 = vst [vmem:[%s6785_s21 + $0xe8] sm:$0xff] %v3781_v20 }
 0x58c PF: > { %s15_s18 = sadd.s32 1, %s5327_s18  }
 0x58d   : > { %p12_p4 = scmp.ge.s32.totalorder %s15_s18, 4  }
 0x58f   :  { %14 = sbr.rel (!%p12_p4) target bundleno = 1 (0x1), region = 70 }

</bundles_post_ra>
